<compile_context>
chip_gen: v7x
topology: tpu7x:2x2x1
jax: 0.10.0
libtpu: 0.0.40
codegen_flags: <defaults>
</compile_context>

<pallas_src>
import jax
import jax.numpy as jnp
from jax.experimental import pallas as pl
from jax.experimental.pallas import tpu as pltpu

LAYER_DIMS = [784, 512, 256, 128, 128, 128]   # feature extractor widths
N_CLASSES = 10
C_PAD = 128                                    # classifier lanes padded 10 -> 128


def _round_up(a, m):
    return ((a + m - 1) // m) * m


def _cdiv(a, b):
    return -(-a // b)


def mlp_kernel(x_ref,
               w1_ref, b1_ref,
               w2_ref, b2_ref,
               w3_ref, b3_ref,
               w4_ref, b4_ref,
               w5_ref, b5_ref,
               wc_ref, bc_ref,
               logits_ref, z_ref):
    """Fused MLP forward on one (TB, 784) batch tile.

    bf16 MXU operands with f32 accumulation; bias add + ReLU in f32 on the VPU.
    Weight/bias refs have constant block indices (VMEM-resident across tiles).
    The tile is processed as two independent row sub-chains so matmuls of one
    chain overlap the elementwise epilogues of the other.
    """
    tb = x_ref.shape[0]
    # two sub-chains only when each half is still a clean bf16-packed block
    n_sub = 2 if (tb >= 32 and tb % 32 == 0) else 1
    rows_per = tb // n_sub

    def linear(h_bf16, w_ref, b_ref):
        y = jnp.dot(h_bf16, w_ref[...], preferred_element_type=jnp.float32)
        return y + b_ref[...]                     # (1, out) broadcasts over rows

    def linear_relu(h_bf16, w_ref, b_ref):
        return jnp.maximum(linear(h_bf16, w_ref, b_ref), 0.0)

    for s in range(n_sub):                         # static unroll; chains independent
        rows = pl.ds(s * rows_per, rows_per)
        h = x_ref[rows, :].astype(jnp.bfloat16)                    # f32 load, bf16 cast (VPU)
        h = linear_relu(h, w1_ref, b1_ref).astype(jnp.bfloat16)    # 784 -> 512
        h = linear_relu(h, w2_ref, b2_ref).astype(jnp.bfloat16)    # 512 -> 256
        h = linear_relu(h, w3_ref, b3_ref).astype(jnp.bfloat16)    # 256 -> 128
        h = linear_relu(h, w4_ref, b4_ref).astype(jnp.bfloat16)    # 128 -> 128
        z = linear_relu(h, w5_ref, b5_ref)                         # 128 -> 128 (f32)

        z_ref[rows, :] = z.astype(z_ref.dtype)

        # classifier padded to 128 output lanes -> unmasked full-width store
        logits = linear(z.astype(jnp.bfloat16), wc_ref, bc_ref)    # (rows, 128)
        logits_ref[rows, :] = logits.astype(logits_ref.dtype)


def _choose_tile(B, tb):
    """Pick batch tile: single tile for small B, else >=2 tiles (v7x megacore)."""
    if B <= 256:
        return _round_up(B, 16), 1
    n_tiles = max(2, _cdiv(B, tb))
    TB = _round_up(_cdiv(B, n_tiles), 16)
    n_tiles = _cdiv(B, TB)
    return TB, n_tiles


def mlp_forward(x, params, *, tb=512):
    """x: (B, 784) float32. params: flat list [W1,b1,...,W5,b5,Wc,bc] with Linear
    weights stored as (in, out). Returns (logits (B, n_classes), z (B, 128)),
    both bfloat16 (kernel writes bf16 to halve output HBM traffic)."""
    B, K = x.shape
    n_classes = params[-1].shape[-1]

    TB, n_tiles = _choose_tile(B, tb)
    Bp = n_tiles * TB

    # x stays f32 and unpadded in K; only pad rows when the batch is ragged.
    x_in = x if Bp == B else jnp.pad(x, ((0, Bp - B), (0, 0)))

    # Weights: bf16 (tiny, ~1.3 MB total). Classifier padded to 128 lanes.
    ws = [params[2 * i].astype(jnp.bfloat16) for i in range(5)]
    bs = [params[2 * i + 1].astype(jnp.float32) for i in range(5)]
    wc = jnp.pad(params[10], ((0, 0), (0, C_PAD - n_classes))).astype(jnp.bfloat16)
    bc = jnp.pad(params[11], ((0, 0), (0, C_PAD - n_classes))).astype(jnp.float32)

    weight_args = []
    for w, b in zip(ws, bs):
        weight_args += [w, b]
    weight_args += [wc, bc]

    # Constant index_map -> fetched once, VMEM-resident across all batch tiles.
    def resident(a):
        return pl.BlockSpec(a.shape, lambda i: (0, 0))

    in_specs = [pl.BlockSpec((TB, K), lambda i: (i, 0))] + \
               [resident(a) for a in weight_args]

    out_shape = (
        jax.ShapeDtypeStruct((Bp, C_PAD), jnp.bfloat16),   # padded logits
        jax.ShapeDtypeStruct((Bp, 128), jnp.bfloat16),     # z features
    )
    out_specs = (
        pl.BlockSpec((TB, C_PAD), lambda i: (i, 0)),
        pl.BlockSpec((TB, 128), lambda i: (i, 0)),
    )

    logits_pad, z_pad = pl.pallas_call(
        mlp_kernel,
        grid=(n_tiles,),
        in_specs=in_specs,
        out_specs=out_specs,
        out_shape=out_shape,
        compiler_params=pltpu.CompilerParams(
            # batch tiles are independent -> shard across both TCs on v7x
            dimension_semantics=("parallel",),
        ),
    )(x_in, *weight_args)

    # Only slice what is actually needed (row slice only for ragged batches).
    if Bp == B:
        return logits_pad[:, :n_classes], z_pad
    return logits_pad[:B, :n_classes], z_pad[:B, :]


def init_params(key, dims, n_classes):
    """Deterministic synthetic init (PyTorch-shaped: Linear weights as (in, out))."""
    params = []
    all_dims = list(zip(dims[:-1], dims[1:])) + [(dims[-1], n_classes)]
    for d_in, d_out in all_dims:
        kw, kb, key = jax.random.split(key, 3)
        scale = 1.0 / jnp.sqrt(jnp.float32(d_in))
        W = jax.random.uniform(kw, (d_in, d_out), jnp.float32, -scale, scale)
        b = jax.random.uniform(kb, (1, d_out), jnp.float32, -scale, scale)
        params += [W, b]
    return params


def mlp_reference(x, params):
    """Plain-JAX reference mirroring kernel math (bf16 operands, f32 accumulate,
    f32 bias + ReLU)."""
    h = x.astype(jnp.float32)
    for i in range(5):
        W, b = params[2 * i], params[2 * i + 1]
        y = jnp.dot(h.astype(jnp.bfloat16), W.astype(jnp.bfloat16),
                    preferred_element_type=jnp.float32) + b
        h = jnp.maximum(y, 0.0)
    z = h
    Wc, bc = params[10], params[11]
    logits = jnp.dot(z.astype(jnp.bfloat16), Wc.astype(jnp.bfloat16),
                     preferred_element_type=jnp.float32) + bc
    return logits, z


if __name__ == "__main__":
    key = jax.random.PRNGKey(0)
    kx, kp = jax.random.split(key)

    B = 8
    x = jax.random.normal(kx, (B, 784), jnp.float32)
    params = init_params(kp, LAYER_DIMS, N_CLASSES)

    logits, z = mlp_forward(x, params)
    logits = jax.block_until_ready(logits)
    z = jax.block_until_ready(z)

    ref_logits, ref_z = mlp_reference(x, params)
    assert logits.shape == (B, N_CLASSES) and z.shape == (B, 128)
    # outputs are bf16 -> compare in f32 with bf16-sized tolerance
    assert jnp.allclose(logits.astype(jnp.float32), ref_logits, atol=2e-2, rtol=2e-2)
    assert jnp.allclose(z.astype(jnp.float32), ref_z, atol=2e-2, rtol=2e-2)

    print("KERNEL_OK")
</pallas_src>

<mosaic_0001>
module attributes {stable_mosaic.version = 11 : i64} {
  func.func @mlp_kernel(%arg0: i32, %arg1: memref<16x784xf32, #tpu.memory_space<vmem>>, %arg2: memref<784x512xbf16, #tpu.memory_space<vmem>>, %arg3: memref<1x512xf32, #tpu.memory_space<vmem>>, %arg4: memref<512x256xbf16, #tpu.memory_space<vmem>>, %arg5: memref<1x256xf32, #tpu.memory_space<vmem>>, %arg6: memref<256x128xbf16, #tpu.memory_space<vmem>>, %arg7: memref<1x128xf32, #tpu.memory_space<vmem>>, %arg8: memref<128x128xbf16, #tpu.memory_space<vmem>>, %arg9: memref<1x128xf32, #tpu.memory_space<vmem>>, %arg10: memref<128x128xbf16, #tpu.memory_space<vmem>>, %arg11: memref<1x128xf32, #tpu.memory_space<vmem>>, %arg12: memref<128x128xbf16, #tpu.memory_space<vmem>>, %arg13: memref<1x128xf32, #tpu.memory_space<vmem>>, %arg14: memref<16x128xbf16, #tpu.memory_space<vmem>>, %arg15: memref<16x128xbf16, #tpu.memory_space<vmem>>) attributes {dimension_semantics = [#tpu.dimension_semantics<parallel>], iteration_bounds = array<i64: 1>, scalar_prefetch = 0 : i64, scratch_operands = 0 : i64, tpu.core_type = #tpu.core_type<tc>, window_params = [{transform_indices = @transform_0, window_bounds = array<i64: 16, 784>}, {pipeline_mode = #tpu.pipeline_mode<synchronous>, transform_indices = @transform_1, window_bounds = array<i64: 784, 512>}, {pipeline_mode = #tpu.pipeline_mode<synchronous>, transform_indices = @transform_2, window_bounds = array<i64: 1, 512>}, {pipeline_mode = #tpu.pipeline_mode<synchronous>, transform_indices = @transform_3, window_bounds = array<i64: 512, 256>}, {pipeline_mode = #tpu.pipeline_mode<synchronous>, transform_indices = @transform_4, window_bounds = array<i64: 1, 256>}, {pipeline_mode = #tpu.pipeline_mode<synchronous>, transform_indices = @transform_5, window_bounds = array<i64: 256, 128>}, {pipeline_mode = #tpu.pipeline_mode<synchronous>, transform_indices = @transform_6, window_bounds = array<i64: 1, 128>}, {pipeline_mode = #tpu.pipeline_mode<synchronous>, transform_indices = @transform_7, window_bounds = array<i64: 128, 128>}, {pipeline_mode = #tpu.pipeline_mode<synchronous>, transform_indices = @transform_8, window_bounds = array<i64: 1, 128>}, {pipeline_mode = #tpu.pipeline_mode<synchronous>, transform_indices = @transform_9, window_bounds = array<i64: 128, 128>}, {pipeline_mode = #tpu.pipeline_mode<synchronous>, transform_indices = @transform_10, window_bounds = array<i64: 1, 128>}, {pipeline_mode = #tpu.pipeline_mode<synchronous>, transform_indices = @transform_11, window_bounds = array<i64: 128, 128>}, {pipeline_mode = #tpu.pipeline_mode<synchronous>, transform_indices = @transform_12, window_bounds = array<i64: 1, 128>}, {transform_indices = @transform_13, window_bounds = array<i64: 16, 128>}, {transform_indices = @transform_14, window_bounds = array<i64: 16, 128>}]} {
    %c0 = arith.constant 0 : index
    %c0_0 = arith.constant 0 : index
    %0 = vector.load %arg1[%c0, %c0_0] : memref<16x784xf32, #tpu.memory_space<vmem>>, vector<16x784xf32>
    %1 = arith.truncf %0 : vector<16x784xf32> to vector<16x784xbf16>
    %c0_1 = arith.constant 0 : index
    %c0_2 = arith.constant 0 : index
    %2 = vector.load %arg2[%c0_1, %c0_2] : memref<784x512xbf16, #tpu.memory_space<vmem>>, vector<784x512xbf16>
    %cst = arith.constant dense<0.000000e+00> : vector<16x512xf32>
    %3 = tpu.matmul %1, %2, %cst {dimension_numbers = #tpu.dot_dimension_numbers<[1], [0], [0], [1], [0, 0, 1, 1], [], []>} : vector<16x784xbf16>, vector<784x512xbf16>, vector<16x512xf32> -> vector<16x512xf32>
    %c0_3 = arith.constant 0 : index
    %c0_4 = arith.constant 0 : index
    %4 = vector.load %arg3[%c0_3, %c0_4] : memref<1x512xf32, #tpu.memory_space<vmem>>, vector<1x512xf32>
    %5 = vector.broadcast %4 : vector<1x512xf32> to vector<16x512xf32>
    %6 = arith.addf %3, %5 : vector<16x512xf32>
    %cst_5 = arith.constant 0.000000e+00 : f32
    %7 = vector.broadcast %cst_5 : f32 to vector<16x512xf32>
    %8 = arith.maximumf %6, %7 : vector<16x512xf32>
    %9 = arith.truncf %8 : vector<16x512xf32> to vector<16x512xbf16>
    %c0_6 = arith.constant 0 : index
    %c0_7 = arith.constant 0 : index
    %10 = vector.load %arg4[%c0_6, %c0_7] : memref<512x256xbf16, #tpu.memory_space<vmem>>, vector<512x256xbf16>
    %cst_8 = arith.constant dense<0.000000e+00> : vector<16x256xf32>
    %11 = tpu.matmul %9, %10, %cst_8 {dimension_numbers = #tpu.dot_dimension_numbers<[1], [0], [0], [1], [0, 0, 1, 1], [], []>} : vector<16x512xbf16>, vector<512x256xbf16>, vector<16x256xf32> -> vector<16x256xf32>
    %c0_9 = arith.constant 0 : index
    %c0_10 = arith.constant 0 : index
    %12 = vector.load %arg5[%c0_9, %c0_10] : memref<1x256xf32, #tpu.memory_space<vmem>>, vector<1x256xf32>
    %13 = vector.broadcast %12 : vector<1x256xf32> to vector<16x256xf32>
    %14 = arith.addf %11, %13 : vector<16x256xf32>
    %cst_11 = arith.constant 0.000000e+00 : f32
    %15 = vector.broadcast %cst_11 : f32 to vector<16x256xf32>
    %16 = arith.maximumf %14, %15 : vector<16x256xf32>
    %17 = arith.truncf %16 : vector<16x256xf32> to vector<16x256xbf16>
    %c0_12 = arith.constant 0 : index
    %c0_13 = arith.constant 0 : index
    %18 = vector.load %arg6[%c0_12, %c0_13] : memref<256x128xbf16, #tpu.memory_space<vmem>>, vector<256x128xbf16>
    %cst_14 = arith.constant dense<0.000000e+00> : vector<16x128xf32>
    %19 = tpu.matmul %17, %18, %cst_14 {dimension_numbers = #tpu.dot_dimension_numbers<[1], [0], [0], [1], [0, 0, 1, 1], [], []>} : vector<16x256xbf16>, vector<256x128xbf16>, vector<16x128xf32> -> vector<16x128xf32>
    %c0_15 = arith.constant 0 : index
    %c0_16 = arith.constant 0 : index
    %20 = vector.load %arg7[%c0_15, %c0_16] : memref<1x128xf32, #tpu.memory_space<vmem>>, vector<1x128xf32>
    %21 = vector.broadcast %20 : vector<1x128xf32> to vector<16x128xf32>
    %22 = arith.addf %19, %21 : vector<16x128xf32>
    %cst_17 = arith.constant 0.000000e+00 : f32
    %23 = vector.broadcast %cst_17 : f32 to vector<16x128xf32>
    %24 = arith.maximumf %22, %23 : vector<16x128xf32>
    %25 = arith.truncf %24 : vector<16x128xf32> to vector<16x128xbf16>
    %c0_18 = arith.constant 0 : index
    %c0_19 = arith.constant 0 : index
    %26 = vector.load %arg8[%c0_18, %c0_19] : memref<128x128xbf16, #tpu.memory_space<vmem>>, vector<128x128xbf16>
    %cst_20 = arith.constant dense<0.000000e+00> : vector<16x128xf32>
    %27 = tpu.matmul %25, %26, %cst_20 {dimension_numbers = #tpu.dot_dimension_numbers<[1], [0], [0], [1], [0, 0, 1, 1], [], []>} : vector<16x128xbf16>, vector<128x128xbf16>, vector<16x128xf32> -> vector<16x128xf32>
    %c0_21 = arith.constant 0 : index
    %c0_22 = arith.constant 0 : index
    %28 = vector.load %arg9[%c0_21, %c0_22] : memref<1x128xf32, #tpu.memory_space<vmem>>, vector<1x128xf32>
    %29 = vector.broadcast %28 : vector<1x128xf32> to vector<16x128xf32>
    %30 = arith.addf %27, %29 : vector<16x128xf32>
    %cst_23 = arith.constant 0.000000e+00 : f32
    %31 = vector.broadcast %cst_23 : f32 to vector<16x128xf32>
    %32 = arith.maximumf %30, %31 : vector<16x128xf32>
    %33 = arith.truncf %32 : vector<16x128xf32> to vector<16x128xbf16>
    %c0_24 = arith.constant 0 : index
    %c0_25 = arith.constant 0 : index
    %34 = vector.load %arg10[%c0_24, %c0_25] : memref<128x128xbf16, #tpu.memory_space<vmem>>, vector<128x128xbf16>
    %cst_26 = arith.constant dense<0.000000e+00> : vector<16x128xf32>
    %35 = tpu.matmul %33, %34, %cst_26 {dimension_numbers = #tpu.dot_dimension_numbers<[1], [0], [0], [1], [0, 0, 1, 1], [], []>} : vector<16x128xbf16>, vector<128x128xbf16>, vector<16x128xf32> -> vector<16x128xf32>
    %c0_27 = arith.constant 0 : index
    %c0_28 = arith.constant 0 : index
    %36 = vector.load %arg11[%c0_27, %c0_28] : memref<1x128xf32, #tpu.memory_space<vmem>>, vector<1x128xf32>
    %37 = vector.broadcast %36 : vector<1x128xf32> to vector<16x128xf32>
    %38 = arith.addf %35, %37 : vector<16x128xf32>
    %cst_29 = arith.constant 0.000000e+00 : f32
    %39 = vector.broadcast %cst_29 : f32 to vector<16x128xf32>
    %40 = arith.maximumf %38, %39 : vector<16x128xf32>
    %41 = arith.truncf %40 : vector<16x128xf32> to vector<16x128xbf16>
    %c0_30 = arith.constant 0 : index
    %c0_31 = arith.constant 0 : index
    %42 = vector.load %arg15[%c0_30, %c0_31] : memref<16x128xbf16, #tpu.memory_space<vmem>>, vector<16x128xbf16>
    tpu.vector_store %arg15[%c0_30, %c0_31], %41 {strides = array<i32>} : memref<16x128xbf16, #tpu.memory_space<vmem>>, vector<16x128xbf16>,
    %43 = arith.truncf %40 : vector<16x128xf32> to vector<16x128xbf16>
    %c0_32 = arith.constant 0 : index
    %c0_33 = arith.constant 0 : index
    %44 = vector.load %arg12[%c0_32, %c0_33] : memref<128x128xbf16, #tpu.memory_space<vmem>>, vector<128x128xbf16>
    %cst_34 = arith.constant dense<0.000000e+00> : vector<16x128xf32>
    %45 = tpu.matmul %43, %44, %cst_34 {dimension_numbers = #tpu.dot_dimension_numbers<[1], [0], [0], [1], [0, 0, 1, 1], [], []>} : vector<16x128xbf16>, vector<128x128xbf16>, vector<16x128xf32> -> vector<16x128xf32>
    %c0_35 = arith.constant 0 : index
    %c0_36 = arith.constant 0 : index
    %46 = vector.load %arg13[%c0_35, %c0_36] : memref<1x128xf32, #tpu.memory_space<vmem>>, vector<1x128xf32>
    %47 = vector.broadcast %46 : vector<1x128xf32> to vector<16x128xf32>
    %48 = arith.addf %45, %47 : vector<16x128xf32>
    %49 = arith.truncf %48 : vector<16x128xf32> to vector<16x128xbf16>
    %c0_37 = arith.constant 0 : index
    %c0_38 = arith.constant 0 : index
    %50 = vector.load %arg14[%c0_37, %c0_38] : memref<16x128xbf16, #tpu.memory_space<vmem>>, vector<16x128xbf16>
    tpu.vector_store %arg14[%c0_37, %c0_38], %49 {strides = array<i32>} : memref<16x128xbf16, #tpu.memory_space<vmem>>, vector<16x128xbf16>,
    return
  }
  func.func @transform_0(%arg0: i32) -> (i32, i32) {
    %c0_i32 = arith.constant 0 : i32
    %c0_i32_0 = arith.constant 0 : i32
    return %arg0, %c0_i32 : i32, i32
  }
  func.func @transform_1(%arg0: i32) -> (i32, i32) {
    %c0_i32 = arith.constant 0 : i32
    %c0_i32_0 = arith.constant 0 : i32
    %c0_i32_1 = arith.constant 0 : i32
    return %c0_i32, %c0_i32_0 : i32, i32
  }
  func.func @transform_2(%arg0: i32) -> (i32, i32) {
    %c0_i32 = arith.constant 0 : i32
    %c0_i32_0 = arith.constant 0 : i32
    %c0_i32_1 = arith.constant 0 : i32
    return %c0_i32, %c0_i32_0 : i32, i32
  }
  func.func @transform_3(%arg0: i32) -> (i32, i32) {
    %c0_i32 = arith.constant 0 : i32
    %c0_i32_0 = arith.constant 0 : i32
    %c0_i32_1 = arith.constant 0 : i32
    return %c0_i32, %c0_i32_0 : i32, i32
  }
  func.func @transform_4(%arg0: i32) -> (i32, i32) {
    %c0_i32 = arith.constant 0 : i32
    %c0_i32_0 = arith.constant 0 : i32
    %c0_i32_1 = arith.constant 0 : i32
    return %c0_i32, %c0_i32_0 : i32, i32
  }
  func.func @transform_5(%arg0: i32) -> (i32, i32) {
    %c0_i32 = arith.constant 0 : i32
    %c0_i32_0 = arith.constant 0 : i32
    %c0_i32_1 = arith.constant 0 : i32
    return %c0_i32, %c0_i32_0 : i32, i32
  }
  func.func @transform_6(%arg0: i32) -> (i32, i32) {
    %c0_i32 = arith.constant 0 : i32
    %c0_i32_0 = arith.constant 0 : i32
    %c0_i32_1 = arith.constant 0 : i32
    return %c0_i32, %c0_i32_0 : i32, i32
  }
  func.func @transform_7(%arg0: i32) -> (i32, i32) {
    %c0_i32 = arith.constant 0 : i32
    %c0_i32_0 = arith.constant 0 : i32
    %c0_i32_1 = arith.constant 0 : i32
    return %c0_i32, %c0_i32_0 : i32, i32
  }
  func.func @transform_8(%arg0: i32) -> (i32, i32) {
    %c0_i32 = arith.constant 0 : i32
    %c0_i32_0 = arith.constant 0 : i32
    %c0_i32_1 = arith.constant 0 : i32
    return %c0_i32, %c0_i32_0 : i32, i32
  }
  func.func @transform_9(%arg0: i32) -> (i32, i32) {
    %c0_i32 = arith.constant 0 : i32
    %c0_i32_0 = arith.constant 0 : i32
    %c0_i32_1 = arith.constant 0 : i32
    return %c0_i32, %c0_i32_0 : i32, i32
  }
  func.func @transform_10(%arg0: i32) -> (i32, i32) {
    %c0_i32 = arith.constant 0 : i32
    %c0_i32_0 = arith.constant 0 : i32
    %c0_i32_1 = arith.constant 0 : i32
    return %c0_i32, %c0_i32_0 : i32, i32
  }
  func.func @transform_11(%arg0: i32) -> (i32, i32) {
    %c0_i32 = arith.constant 0 : i32
    %c0_i32_0 = arith.constant 0 : i32
    %c0_i32_1 = arith.constant 0 : i32
    return %c0_i32, %c0_i32_0 : i32, i32
  }
  func.func @transform_12(%arg0: i32) -> (i32, i32) {
    %c0_i32 = arith.constant 0 : i32
    %c0_i32_0 = arith.constant 0 : i32
    %c0_i32_1 = arith.constant 0 : i32
    return %c0_i32, %c0_i32_0 : i32, i32
  }
  func.func @transform_13(%arg0: i32) -> (i32, i32) {
    %c0_i32 = arith.constant 0 : i32
    %c0_i32_0 = arith.constant 0 : i32
    return %arg0, %c0_i32 : i32, i32
  }
  func.func @transform_14(%arg0: i32) -> (i32, i32) {
    %c0_i32 = arith.constant 0 : i32
    %c0_i32_0 = arith.constant 0 : i32
    return %arg0, %c0_i32 : i32, i32
  }
}

</mosaic_0001>

<bundles_post_ra>
// kernel: tpu_custom_call.1
= control target key start
LH: loop header
LB: loop body
LE: loop exit
PB: predicated region body
PF: predicated region fallthrough
CT: control target
= control target key end

     0   :  { %20 = vsyncpa [#allocation3], 0  ;;  %s4213_s0 = inlined_call_operand.hbm [shape: f32[16,784], index: 0, kind: input, shape index: {}]   ;;  %s4214_s1 = inlined_call_operand.hbm [shape: bf16[784,512], index: 1, kind: input, shape index: {}]   ;;  %s4215_s2 = inlined_call_operand.vmem [shape: f32[1,512], index: 2, kind: input, shape index: {}]   ;;  %s4216_s3 = inlined_call_operand.hbm [shape: bf16[512,256], index: 3, kind: input, shape index: {}]   ;;  %s4217_s4 = inlined_call_operand.vmem [shape: f32[1,256], index: 4, kind: input, shape index: {}]   ;;  %s4218_s5 = inlined_call_operand.hbm [shape: bf16[256,128], index: 5, kind: input, shape index: {}]   ;;  %s4219_s6 = inlined_call_operand.vmem [shape: f32[1,128], index: 6, kind: input, shape index: {}]   ;;  %s4220_s7 = inlined_call_operand.hbm [shape: bf16[128,128], index: 7, kind: input, shape index: {}]   ;;  %s4221_s8 = inlined_call_operand.vmem [shape: f32[1,128], index: 8, kind: input, shape index: {}]   ;;  %s4222_s9 = inlined_call_operand.hbm [shape: bf16[128,128], index: 9, kind: input, shape index: {}]   ;;  %s4223_s10 = inlined_call_operand.vmem [shape: f32[1,128], index: 10, kind: input, shape index: {}]   ;;  %s4224_s11 = inlined_call_operand.hbm [shape: bf16[128,128], index: 11, kind: input, shape index: {}]   ;;  %s4225_s12 = inlined_call_operand.vmem [shape: f32[1,128], index: 12, kind: input, shape index: {}]   ;;  %s4226_s13 = inlined_call_operand.hbm [shape: bf16[16,128], index: 13, kind: output, shape index: {0}]   ;;  %s4227_s14 = inlined_call_operand.hbm [shape: bf16[16,128], index: 14, kind: output, shape index: {1}]  }
   0x1   :  { %21 = vsyncpa [#allocation6], 0 }
   0x2   :  { %22 = vsyncpa [#allocation9], 0 }
   0x3   :  { %23 = vsyncpa [#allocation12], 0 }
   0x4   :  { %24 = vsyncpa [#allocation4], 0 }
   0x5   :  { %25 = vsyncpa [#allocation16], 0  ;;  %s3920_s29 = smov [#allocation5]   ;;  %s3710_s17 = scalar_lea.hbm %s4214_s1, 25088 }
   0x6   :  { %s43_s30 = sshll.u32 %s3920_s29, 4  ;;  %p3711_p0 = scmp.ne.s32.totalorder %s4214_s1, %s3710_s17  ;;  %s44_s30 = int_to_ptr.vmem [resolvable:$true] %s43_s30 }
   0x7   :  { %p3714_p1 = scmp.lt.u32.totalorder %s3710_s17, %s4214_s1 }
   0x9   :  { %p3716_p2 = pnand %p3714_p1, %p3711_p0 }
   0xb   :  { %3719 = shalt.err (!%p3716_p2)
}
   0xc   :  { %s3720_s22 = scalar_lea.vmem %s44_s30, 25088  ;;  %p3725_p4 = scmp.lt.s32.totalorder %s44_s30, %s44_s30 }
   0xd   :  { %p3721_p3 = scmp.ne.s32.totalorder %s44_s30, %s3720_s22  ;;  %p3726_p5 = scmp.lt.s32.totalorder %s3720_s22, %s3720_s22 }
   0xf   :  { %p3727_p6 = por %p3726_p5, %p3725_p4 }
  0x11   :  { %p3728_p7 = pnand %p3727_p6, %p3721_p3 }
  0x13   :  { %3731 = shalt.err (!%p3728_p7)
}
  0x14   :  { %s3921_s23 = smov 256   ;;  %s3922_s24 = smov 16  }
  0x15   :  { %49 = dma.hbm_to_vmem [thread:$0]  %s4214_s1, 25088, %s44_s30, [#allocation6], %s3921_s23, %s3921_s23, %s3922_s24  }
  0x16   :  { %s3923_s27 = smov [#allocation8]   ;;  %s3732_s16 = scalar_lea.hbm %s4218_s5, 2048 }
  0x17   :  { %s71_s28 = sshll.u32 %s3923_s27, 4  ;;  %p3733_p8 = scmp.ne.s32.totalorder %s4218_s5, %s3732_s16  ;;  %s72_s28 = int_to_ptr.vmem [resolvable:$true] %s71_s28 }
  0x18   :  { %p3736_p9 = scmp.lt.u32.totalorder %s3732_s16, %s4218_s5 }
  0x1a   :  { %p3738_p10 = pnand %p3736_p9, %p3733_p8 }
  0x1c   :  { %3741 = shalt.err (!%p3738_p10)
}
  0x1d   :  { %s3742_s21 = scalar_lea.vmem %s72_s28, 2048  ;;  %p3747_p12 = scmp.lt.s32.totalorder %s72_s28, %s72_s28 }
  0x1e   :  { %p3743_p11 = scmp.ne.s32.totalorder %s72_s28, %s3742_s21  ;;  %p3748_p13 = scmp.lt.s32.totalorder %s3742_s21, %s3742_s21 }
  0x20   :  { %p3749_p0 = por %p3748_p13, %p3747_p12 }
  0x22   :  { %p3750_p1 = pnand %p3749_p0, %p3743_p11 }
  0x24   :  { %3753 = shalt.err (!%p3750_p1)
}
  0x25   :  { %s3924_s1 = smov 64   ;;  %s3925_s30 = smov 4  }
  0x26   :  { %77 = dma.hbm_to_vmem [thread:$0]  %s4218_s5, 2048, %s72_s28, [#allocation9], %s3924_s1, %s3924_s1, %s3925_s30  }
  0x27   :  { %s3926_s24 = smov [#allocation11]   ;;  %s3927_s26 = smov [#allocation2]  }
  0x28   :  { %s99_s25 = sshll.u32 %s3926_s24, 4  ;;  %s31_s27 = sshll.u32 %s3927_s26, 4  ;;  %s100_s25 = int_to_ptr.vmem [resolvable:$true] %s99_s25  ;;  %s4042_s27 = int_to_ptr.vmem [resolvable:$true] %s31_s27 }
  0x29   :  { %s3754_s16 = scalar_lea.hbm %s4222_s9, 1024 }
  0x2a   :  { %p3755_p2 = scmp.ne.s32.totalorder %s4222_s9, %s3754_s16  ;;  %p3758_p3 = scmp.lt.u32.totalorder %s3754_s16, %s4222_s9 }
  0x2c   :  { %p3760_p4 = pnand %p3758_p3, %p3755_p2 }
  0x2e   :  { %3763 = shalt.err (!%p3760_p4)
}
  0x2f   :  { %s3764_s5 = scalar_lea.vmem %s100_s25, 1024  ;;  %p3769_p6 = scmp.lt.s32.totalorder %s100_s25, %s100_s25 }
  0x30   :  { %p3765_p5 = scmp.ne.s32.totalorder %s100_s25, %s3764_s5  ;;  %p3770_p7 = scmp.lt.s32.totalorder %s3764_s5, %s3764_s5 }
  0x32   :  { %p3771_p8 = por %p3770_p7, %p3769_p6 }
  0x34   :  { %p3772_p9 = pnand %p3771_p8, %p3765_p5 }
  0x36   :  { %3775 = shalt.err (!%p3772_p9)
}
  0x37   :  { %105 = dma.hbm_to_vmem [thread:$0]  %s4222_s9, 1024, %s100_s25, [#allocation12], %s3924_s1, %s3924_s1, %s3925_s30  }
  0x38   :  { %s3776_s24 = scalar_lea.hbm %s4213_s0, 1792 }
  0x39   :  { %p3777_p10 = scmp.ne.s32.totalorder %s4213_s0, %s3776_s24  ;;  %p3780_p11 = scmp.lt.u32.totalorder %s3776_s24, %s4213_s0 }
  0x3b   :  { %p3782_p12 = pnand %p3780_p11, %p3777_p10 }
  0x3d   :  { %3785 = shalt.err (!%p3782_p12)
}
  0x3e   :  { %s3786_s17 = scalar_lea.vmem %s4042_s27, 1792  ;;  %p3791_p0 = scmp.lt.s32.totalorder %s4042_s27, %s4042_s27 }
  0x3f   :  { %p3787_p13 = scmp.ne.s32.totalorder %s4042_s27, %s3786_s17  ;;  %p3792_p1 = scmp.lt.s32.totalorder %s3786_s17, %s3786_s17 }
  0x41   :  { %p3793_p2 = por %p3792_p1, %p3791_p0 }
  0x43   :  { %p3794_p3 = pnand %p3793_p2, %p3787_p13 }
  0x45   :  { %3797 = shalt.err (!%p3794_p3)
}
  0x46   :  { %s3928_s9 = smov 896   ;;  %s3929_s25 = smov 56  }
  0x47   :  { %37 = dma.hbm_to_vmem [thread:$0]  %s4213_s0, 1792, %s4042_s27, [#allocation3], %s3928_s9, %s3928_s9, %s3929_s25  }
  0x48   :  { %s3930_s20 = smov [#allocation7]   ;;  %s3798_s22 = scalar_lea.hbm %s4216_s3, 8192 }
  0x49   :  { %s57_s5 = sshll.u32 %s3930_s20, 4  ;;  %p3799_p4 = scmp.ne.s32.totalorder %s4216_s3, %s3798_s22  ;;  %s58_s5 = int_to_ptr.vmem [resolvable:$true] %s57_s5 }
  0x4a   :  { %p3802_p5 = scmp.lt.u32.totalorder %s3798_s22, %s4216_s3 }
  0x4c   :  { %p3804_p6 = pnand %p3802_p5, %p3799_p4 }
  0x4e   :  { %3807 = shalt.err (!%p3804_p6)
}
  0x4f   :  { %s3808_s15 = scalar_lea.vmem %s58_s5, 8192  ;;  %p3813_p8 = scmp.lt.s32.totalorder %s58_s5, %s58_s5 }
  0x50   :  { %p3809_p7 = scmp.ne.s32.totalorder %s58_s5, %s3808_s15  ;;  %p3814_p9 = scmp.lt.s32.totalorder %s3808_s15, %s3808_s15 }
  0x52   :  { %p3815_p10 = por %p3814_p9, %p3813_p8 }
  0x54   :  { %p3816_p11 = pnand %p3815_p10, %p3809_p7 }
  0x56   :  { %3819 = shalt.err (!%p3816_p11)
}
  0x57   :  { %s3931_s0 = smov 128   ;;  %s3932_s27 = smov 8  }
  0x58   :  { %63 = dma.hbm_to_vmem [thread:$0]  %s4216_s3, 8192, %s58_s5, [#allocation6], %s3931_s0, %s3931_s0, %s3932_s27  }
  0x59   :  { %s3933_s9 = smov [#allocation10]   ;;  %s3934_s18 = smov [#allocation13]  }
  0x5a   :  { %s85_s25 = sshll.u32 %s3933_s9, 4  ;;  %s113_s19 = sshll.u32 %s3934_s18, 4  ;;  %s86_s25 = int_to_ptr.vmem [resolvable:$true] %s85_s25  ;;  %s114_s19 = int_to_ptr.vmem [resolvable:$true] %s113_s19 }
  0x5b   :  { %s3820_s21 = scalar_lea.hbm %s4220_s7, 1024 }
  0x5c   :  { %p3821_p12 = scmp.ne.s32.totalorder %s4220_s7, %s3820_s21  ;;  %p3824_p13 = scmp.lt.u32.totalorder %s3820_s21, %s4220_s7 }
  0x5e   :  { %p3826_p0 = pnand %p3824_p13, %p3821_p12 }
  0x60   :  { %3829 = shalt.err (!%p3826_p0)
}
  0x61   :  { %s3830_s3 = scalar_lea.vmem %s86_s25, 1024  ;;  %p3835_p2 = scmp.lt.s32.totalorder %s86_s25, %s86_s25 }
  0x62   :  { %p3831_p1 = scmp.ne.s32.totalorder %s86_s25, %s3830_s3  ;;  %p3836_p3 = scmp.lt.s32.totalorder %s3830_s3, %s3830_s3 }
  0x64   :  { %p3837_p4 = por %p3836_p3, %p3835_p2 }
  0x66   :  { %p3838_p5 = pnand %p3837_p4, %p3831_p1 }
  0x68   :  { %3841 = shalt.err (!%p3838_p5)
}
  0x69   :  { %91 = dma.hbm_to_vmem [thread:$0]  %s4220_s7, 1024, %s86_s25, [#allocation9], %s3924_s1, %s3924_s1, %s3925_s30  }
  0x6a   :  { %s3842_s27 = scalar_lea.hbm %s4224_s11, 1024 }
  0x6b   :  { %p3843_p6 = scmp.ne.s32.totalorder %s4224_s11, %s3842_s27  ;;  %p3846_p7 = scmp.lt.u32.totalorder %s3842_s27, %s4224_s11 }
  0x6d   :  { %p3848_p8 = pnand %p3846_p7, %p3843_p6 }
  0x6f   :  { %3851 = shalt.err (!%p3848_p8)
}
  0x70   :  { %s3852_s20 = scalar_lea.vmem %s114_s19, 1024  ;;  %p3857_p10 = scmp.lt.s32.totalorder %s114_s19, %s114_s19 }
  0x71   :  { %p3853_p9 = scmp.ne.s32.totalorder %s114_s19, %s3852_s20  ;;  %p3858_p11 = scmp.lt.s32.totalorder %s3852_s20, %s3852_s20 }
  0x73   :  { %p3859_p12 = por %p3858_p11, %p3857_p10 }
  0x75   :  { %p3860_p13 = pnand %p3859_p12, %p3853_p9 }
  0x77   :  { %3863 = shalt.err (!%p3860_p13)
}
  0x78   :  { %119 = dma.hbm_to_vmem [thread:$0]  %s4224_s11, 1024, %s114_s19, [#allocation12], %s3924_s1, %s3924_s1, %s3925_s30  }
  0x79   :  { %3908 = dma.done.wait [#allocation3], 1792  }
  0x7a   :  { %3909 = vsyncadd [#allocation3], 4294965504 }
  0x7b   :  { %3910 = dma.done.wait [#allocation6], 33280  }
  0x7c   :  { %3911 = vsyncadd [#allocation6], 4294934016 }
  0x7d   :  { %3912 = dma.done.wait [#allocation9], 3072  }
  0x7e   :  { %3913 = vsyncadd [#allocation9], 4294964224 }
  0x7f   :  { %3914 = dma.done.wait [#allocation12], 2048  }
  0x80   :  { %3915 = vsyncadd [#allocation12], 4294965248  ;;  %v3280_v0 = vld [vmem:[#allocation5 + $0x4] ss:$16 sps:$4 sm:$0xff]   ;;  %v3282_v1 = vld [vmem:[#allocation5 + $0xc] ss:$16 sps:$4 sm:$0xff]  }
  0x81   :  { %1367 = vmatprep.subr.bf16.mxu0 %v3280_v0  ;;  %v3284_v2 = vld [vmem:[#allocation5] ss:$16 sps:$4 sm:$0xff]   ;;  %v3285_v3 = vld [vmem:[#allocation5 + $0x8] ss:$16 sps:$4 sm:$0xff]   ;;  %1539 = vmatprep.subr.bf16.mxu1 %v3282_v1  ;;  %v3286_v4 = vld [vmem:[#allocation5 + $0x24] ss:$16 sps:$4 sm:$0xff]  }
  0x82   :  { %1368 = vmatpush1.bf16.msra.mxu0 %v3284_v2  ;;  %1540 = vmatpush1.bf16.msra.mxu1 %v3285_v3  ;;  %v3288_v5 = vld [vmem:[#allocation5 + $0x2c] ss:$16 sps:$4 sm:$0xff]   ;;  %v3290_v6 = vld [vmem:[#allocation5 + $0x20] ss:$16 sps:$4 sm:$0xff]   ;;  %v3291_v7 = vld [vmem:[#allocation5 + $0x28] ss:$16 sps:$4 sm:$0xff]  }
  0x83   :  { %1369 = vmatprep.subr.bf16.mxu0 %v3286_v4  ;;  %1541 = vmatprep.subr.bf16.mxu1 %v3288_v5  ;;  %v3292_v8 = vld [vmem:[#allocation5 + $0x44] ss:$16 sps:$4 sm:$0xff]   ;;  %v3294_v9 = vld [vmem:[#allocation5 + $0x4c] ss:$16 sps:$4 sm:$0xff]   ;;  %v3296_v10 = vld [vmem:[#allocation5 + $0x40] ss:$16 sps:$4 sm:$0xff]  }
  0x84   :  { %v3297_v11 = vld [vmem:[#allocation5 + $0x48] ss:$16 sps:$4 sm:$0xff]   ;;  %v3298_v12 = vld [vmem:[#allocation5 + $0x64] ss:$16 sps:$4 sm:$0xff]   ;;  %v3300_v13 = vld [vmem:[#allocation5 + $0x6c] ss:$16 sps:$4 sm:$0xff]  }
  0x85   :  { %v3302_v14 = vld [vmem:[#allocation5 + $0x60] ss:$16 sps:$4 sm:$0xff]   ;;  %v3303_v15 = vld [vmem:[#allocation5 + $0x68] ss:$16 sps:$4 sm:$0xff]   ;;  %v3304_v16 = vld [vmem:[#allocation5 + $0x84] ss:$16 sps:$4 sm:$0xff]  }
  0x86   :  { %1370 = vmatpush1.bf16.msra.mxu0 %v3290_v6  ;;  %1542 = vmatpush1.bf16.msra.mxu1 %v3291_v7  ;;  %v3306_v17 = vld [vmem:[#allocation5 + $0x8c] ss:$16 sps:$4 sm:$0xff]   ;;  %v3308_v18 = vld [vmem:[#allocation5 + $0x80] ss:$16 sps:$4 sm:$0xff]   ;;  %v3309_v19 = vld [vmem:[#allocation5 + $0x88] ss:$16 sps:$4 sm:$0xff]  }
  0x87   :  { %1371 = vmatprep.subr.bf16.mxu0 %v3292_v8  ;;  %1543 = vmatprep.subr.bf16.mxu1 %v3294_v9  ;;  %v3310_v20 = vld [vmem:[#allocation5 + $0xa4] ss:$16 sps:$4 sm:$0xff]   ;;  %v3312_v21 = vld [vmem:[#allocation5 + $0xac] ss:$16 sps:$4 sm:$0xff]   ;;  %v3314_v22 = vld [vmem:[#allocation5 + $0xa0] ss:$16 sps:$4 sm:$0xff]  }
  0x88   :  { %v3315_v23 = vld [vmem:[#allocation5 + $0xa8] ss:$16 sps:$4 sm:$0xff]   ;;  %v3316_v24 = vld [vmem:[#allocation5 + $0xc4] ss:$16 sps:$4 sm:$0xff]   ;;  %v3318_v25 = vld [vmem:[#allocation5 + $0xcc] ss:$16 sps:$4 sm:$0xff]  }
  0x89   :  { %v3320_v26 = vld [vmem:[#allocation5 + $0xc0] ss:$16 sps:$4 sm:$0xff]   ;;  %v3321_v27 = vld [vmem:[#allocation5 + $0xc8] ss:$16 sps:$4 sm:$0xff]   ;;  %v3322_v28 = vld [vmem:[#allocation5 + $0xe4] ss:$16 sps:$4 sm:$0xff]  }
  0x8a   :  { %1372 = vmatpush1.bf16.msra.mxu0 %v3296_v10  ;;  %1544 = vmatpush1.bf16.msra.mxu1 %v3297_v11  ;;  %v3324_v29 = vld [vmem:[#allocation5 + $0xec] ss:$16 sps:$4 sm:$0xff]   ;;  %v3326_v30 = vld [vmem:[#allocation5 + $0xe0] ss:$16 sps:$4 sm:$0xff]   ;;  %v3327_v31 = vld [vmem:[#allocation5 + $0xe8] ss:$16 sps:$4 sm:$0xff]  }
  0x8b   :  { %1373 = vmatprep.subr.bf16.mxu0 %v3298_v12  ;;  %1545 = vmatprep.subr.bf16.mxu1 %v3300_v13  ;;  %v3328_v32 = vld [vmem:[#allocation5 + $0x104] ss:$16 sps:$4 sm:$0xff]   ;;  %v3330_v33 = vld [vmem:[#allocation5 + $0x10c] ss:$16 sps:$4 sm:$0xff]   ;;  %v3332_v34 = vld [vmem:[#allocation5 + $0x100] ss:$16 sps:$4 sm:$0xff]  }
  0x8c   :  { %v3333_v35 = vld [vmem:[#allocation5 + $0x108] ss:$16 sps:$4 sm:$0xff]   ;;  %v3334_v36 = vld [vmem:[#allocation5 + $0x124] ss:$16 sps:$4 sm:$0xff]   ;;  %v3336_v37 = vld [vmem:[#allocation5 + $0x12c] ss:$16 sps:$4 sm:$0xff]  }
  0x8d   :  { %v3338_v38 = vld [vmem:[#allocation5 + $0x120] ss:$16 sps:$4 sm:$0xff]   ;;  %v3339_v39 = vld [vmem:[#allocation5 + $0x128] ss:$16 sps:$4 sm:$0xff]   ;;  %v3340_v40 = vld [vmem:[#allocation5 + $0x144] ss:$16 sps:$4 sm:$0xff]  }
  0x8e   :  { %1374 = vmatpush1.bf16.msra.mxu0 %v3302_v14  ;;  %1546 = vmatpush1.bf16.msra.mxu1 %v3303_v15  ;;  %v3342_v41 = vld [vmem:[#allocation5 + $0x14c] ss:$16 sps:$4 sm:$0xff]   ;;  %v3344_v42 = vld [vmem:[#allocation5 + $0x140] ss:$16 sps:$4 sm:$0xff]   ;;  %v3345_v43 = vld [vmem:[#allocation5 + $0x148] ss:$16 sps:$4 sm:$0xff]  }
  0x8f   :  { %1375 = vmatprep.subr.bf16.mxu0 %v3304_v16  ;;  %1547 = vmatprep.subr.bf16.mxu1 %v3306_v17  ;;  %v3346_v44 = vld [vmem:[#allocation5 + $0x164] ss:$16 sps:$4 sm:$0xff]   ;;  %v3348_v45 = vld [vmem:[#allocation5 + $0x16c] ss:$16 sps:$4 sm:$0xff]   ;;  %v3350_v48 = vld [vmem:[#allocation5 + $0x160] ss:$16 sps:$4 sm:$0xff]  }
  0x90   :  { %v145_v46 = vld [vmem:[#allocation2 + $0x8] sm:$0xff]  ;;  %v152_v47 = vld [vmem:[#allocation2 + $0x40] sm:$0xff]  ;;  %v151_v5 = vld [vmem:[#allocation2 + $0x38] sm:$0xff]  ;;  %vm1363_vm0 = vcmask 130048   ;;  %vm3937_vm1 = vmmov 0   ;;  %s3938_s24 = smov [#allocation15]  }
  0x91   :  { %v3351_v49 = vld [vmem:[#allocation5 + $0x168] ss:$16 sps:$4 sm:$0xff]   ;;  %v159_v50 = vpack.c.bf16 %v152_v47, %v145_v46  ;;  %v3352_v51 = vld [vmem:[#allocation5 + $0x184] ss:$16 sps:$4 sm:$0xff]   ;;  %v3354_v52 = vld [vmem:[#allocation5 + $0x18c] ss:$16 sps:$4 sm:$0xff]  }
  0x92   :  { %1376 = vmatpush1.bf16.msra.mxu0 %v3308_v18  ;;  %1548 = vmatpush1.bf16.msra.mxu1 %v3309_v19  ;;  %v3356_v53 = vld [vmem:[#allocation5 + $0x180] ss:$16 sps:$4 sm:$0xff]   ;;  %v3357_v54 = vld [vmem:[#allocation5 + $0x188] ss:$16 sps:$4 sm:$0xff]   ;;  %v3358_v55 = vld [vmem:[#allocation5 + $0x1a4] ss:$16 sps:$4 sm:$0xff]  }
  0x93   :  { %1377 = vmatprep.subr.bf16.mxu0 %v3310_v20  ;;  %1549 = vmatprep.subr.bf16.mxu1 %v3312_v21  ;;  %v3360_v56 = vld [vmem:[#allocation5 + $0x1ac] ss:$16 sps:$4 sm:$0xff]   ;;  %v3362_v57 = vld [vmem:[#allocation5 + $0x1a0] ss:$16 sps:$4 sm:$0xff]   ;;  %v3363_v58 = vld [vmem:[#allocation5 + $0x1a8] ss:$16 sps:$4 sm:$0xff]  }
  0x94   :  { %1399 = vmatprep.mubr.bf16.mxu0 %v159_v50  ;;  %1571 = vmatprep.mubr.bf16.mxu1 %v159_v50  ;;  %v3364_v59 = vld [vmem:[#allocation5 + $0x1c4] ss:$16 sps:$4 sm:$0xff]   ;;  %v3366_v60 = vld [vmem:[#allocation5 + $0x1cc] ss:$16 sps:$4 sm:$0xff]   ;;  %v3368_v61 = vld [vmem:[#allocation5 + $0x1c0] ss:$16 sps:$4 sm:$0xff]  }
  0x95   :  { %v3369_v62 = vld [vmem:[#allocation5 + $0x1c8] ss:$16 sps:$4 sm:$0xff]   ;;  %v3370_v63 = vld [vmem:[#allocation5 + $0x1e4] ss:$16 sps:$4 sm:$0xff]   ;;  %v3372_v0 = vld [vmem:[#allocation5 + $0x1ec] ss:$16 sps:$4 sm:$0xff]  }
  0x96   :  { %1378 = vmatpush1.bf16.msra.mxu0 %v3314_v22  ;;  %1550 = vmatpush1.bf16.msra.mxu1 %v3315_v23  ;;  %v3374_v1 = vld [vmem:[#allocation5 + $0x1e0] ss:$16 sps:$4 sm:$0xff]   ;;  %v3375_v2 = vld [vmem:[#allocation5 + $0x1e8] ss:$16 sps:$4 sm:$0xff]   ;;  %v3378_v3 = vld [vmem:[#allocation5 + $0x204] ss:$16 sps:$4 sm:$0xff]  }
  0x97   :  { %1379 = vmatprep.subr.bf16.mxu0 %v3316_v24  ;;  %1551 = vmatprep.subr.bf16.mxu1 %v3318_v25  ;;  %v144_v4 = vld [vmem:[#allocation2] sm:$0xff]  ;;  %v3381_v6 = vld [vmem:[#allocation5 + $0x20c] ss:$16 sps:$4 sm:$0xff]   ;;  %v3379_v8 = vld [vmem:[#allocation5 + $0x208] ss:$16 sps:$4 sm:$0xff]   ;;  %s2768_s26 = sshll.u32 %s3938_s24, 4  ;;  %s2769_s26 = int_to_ptr.vmem [resolvable:$true] %s2768_s26 }
  0x98   :  { %v3376_v7 = vld [vmem:[#allocation5 + $0x200] ss:$16 sps:$4 sm:$0xff]   ;;  %v158_v9 = vpack.c.bf16 %v151_v5, %v144_v4  ;;  %v3384_v10 = vld [vmem:[#allocation5 + $0x224] ss:$16 sps:$4 sm:$0xff]   ;;  %v3387_v11 = vld [vmem:[#allocation5 + $0x22c] ss:$16 sps:$4 sm:$0xff]   ;;  %p3869_p1 = scmp.lt.s32.totalorder %s2769_s26, %s2769_s26 }
  0x99   :  { %v3382_v12 = vld [vmem:[#allocation5 + $0x220] ss:$16 sps:$4 sm:$0xff]   ;;  %v3385_v13 = vld [vmem:[#allocation5 + $0x228] ss:$16 sps:$4 sm:$0xff]   ;;  %v3390_v14 = vld [vmem:[#allocation5 + $0x244] ss:$16 sps:$4 sm:$0xff]  }
  0x9a   :  { %1380 = vmatpush1.bf16.msra.mxu0 %v3320_v26  ;;  %1552 = vmatpush1.bf16.msra.mxu1 %v3321_v27  ;;  %v3393_v15 = vld [vmem:[#allocation5 + $0x24c] ss:$16 sps:$4 sm:$0xff]   ;;  %v3388_v16 = vld [vmem:[#allocation5 + $0x240] ss:$16 sps:$4 sm:$0xff]   ;;  %v3391_v17 = vld [vmem:[#allocation5 + $0x248] ss:$16 sps:$4 sm:$0xff]  }
  0x9b   :  { %1381 = vmatprep.subr.bf16.mxu0 %v3322_v28  ;;  %1553 = vmatprep.subr.bf16.mxu1 %v3324_v29  ;;  %v3396_v18 = vld [vmem:[#allocation5 + $0x264] ss:$16 sps:$4 sm:$0xff]   ;;  %v3399_v19 = vld [vmem:[#allocation5 + $0x26c] ss:$16 sps:$4 sm:$0xff]   ;;  %v3394_v20 = vld [vmem:[#allocation5 + $0x260] ss:$16 sps:$4 sm:$0xff]  }
  0x9c   :  { %v3397_v21 = vld [vmem:[#allocation5 + $0x268] ss:$16 sps:$4 sm:$0xff]   ;;  %v3402_v22 = vld [vmem:[#allocation5 + $0x284] ss:$16 sps:$4 sm:$0xff]   ;;  %v3405_v23 = vld [vmem:[#allocation5 + $0x28c] ss:$16 sps:$4 sm:$0xff]  }
  0x9d   :  { %v3400_v24 = vld [vmem:[#allocation5 + $0x280] ss:$16 sps:$4 sm:$0xff]   ;;  %v3403_v25 = vld [vmem:[#allocation5 + $0x288] ss:$16 sps:$4 sm:$0xff]   ;;  %v3408_v26 = vld [vmem:[#allocation5 + $0x2a4] ss:$16 sps:$4 sm:$0xff]  }
  0x9e   :  { %1382 = vmatpush1.bf16.msra.mxu0 %v3326_v30  ;;  %1554 = vmatpush1.bf16.msra.mxu1 %v3327_v31  ;;  %v3411_v27 = vld [vmem:[#allocation5 + $0x2ac] ss:$16 sps:$4 sm:$0xff]   ;;  %v3406_v28 = vld [vmem:[#allocation5 + $0x2a0] ss:$16 sps:$4 sm:$0xff]   ;;  %v3409_v29 = vld [vmem:[#allocation5 + $0x2a8] ss:$16 sps:$4 sm:$0xff]  }
  0x9f   :  { %1383 = vmatprep.subr.bf16.mxu0 %v3328_v32  ;;  %1555 = vmatprep.subr.bf16.mxu1 %v3330_v33  ;;  %v3414_v30 = vld [vmem:[#allocation5 + $0x2c4] ss:$16 sps:$4 sm:$0xff]   ;;  %v3417_v31 = vld [vmem:[#allocation5 + $0x2cc] ss:$16 sps:$4 sm:$0xff]   ;;  %v3430_v47 = vld [vmem:[#allocation5 + $0x320] ss:$16 sps:$4 sm:$0xff]  }
  0xa0   :  { %v147_v32 = vld [vmem:[#allocation2 + $0x18] sm:$0xff]  ;;  %v154_v33 = vld [vmem:[#allocation2 + $0x50] sm:$0xff]  ;;  %s3864_s3 = scalar_lea.vmem %s2769_s26, 128 }
  0xa1   :  { %v3435_v46 = vld [vmem:[#allocation5 + $0x32c] ss:$16 sps:$4 sm:$0xff]   ;;  %v3463_v4 = vld [vmem:[#allocation5 + $0x3c8] ss:$16 sps:$4 sm:$0xff]   ;;  %v3468_v5 = vld [vmem:[#allocation5 + $0x3e4] ss:$16 sps:$4 sm:$0xff]   ;;  %p3865_p0 = scmp.ne.s32.totalorder %s2769_s26, %s3864_s3  ;;  %p3870_p2 = scmp.lt.s32.totalorder %s3864_s3, %s3864_s3 }
  0xa2   :  { %1384 = vmatpush1.bf16.msra.mxu0 %v3332_v34  ;;  %1556 = vmatpush1.bf16.msra.mxu1 %v3333_v35  ;;  %v3412_v34 = vld [vmem:[#allocation5 + $0x2c0] ss:$16 sps:$4 sm:$0xff]   ;;  %v3415_v35 = vld [vmem:[#allocation5 + $0x2c8] ss:$16 sps:$4 sm:$0xff]   ;;  %v3441_v50 = vld [vmem:[#allocation5 + $0x34c] ss:$16 sps:$4 sm:$0xff]  }
  0xa3   :  { %1385 = vmatprep.subr.bf16.mxu0 %v3334_v36  ;;  %1557 = vmatprep.subr.bf16.mxu1 %v3336_v37  ;;  %v161_v36 = vpack.c.bf16 %v154_v33, %v147_v32  ;;  %v3420_v37 = vld [vmem:[#allocation5 + $0x2e4] ss:$16 sps:$4 sm:$0xff]   ;;  %v3501_v32 = vld [vmem:[#allocation5 + $0x48c] ss:$16 sps:$4 sm:$0xff]   ;;  %v3496_v33 = vld [vmem:[#allocation5 + $0x480] ss:$16 sps:$4 sm:$0xff]   ;;  %p3871_p3 = por %p3870_p2, %p3869_p1 }
  0xa5   :  { %p3872_p4 = pnand %p3871_p3, %p3865_p0 }
  0xa6   :  { %1386 = vmatpush1.bf16.msra.mxu0 %v3338_v38  ;;  %1558 = vmatpush1.bf16.msra.mxu1 %v3339_v39  ;;  %v3423_v38 = vld [vmem:[#allocation5 + $0x2ec] ss:$16 sps:$4 sm:$0xff]   ;;  %v3418_v39 = vld [vmem:[#allocation5 + $0x2e0] ss:$16 sps:$4 sm:$0xff]  }
  0xa7   :  { %1387 = vmatprep.subr.bf16.mxu0 %v3340_v40  ;;  %1559 = vmatprep.subr.bf16.mxu1 %v3342_v41  ;;  %v3421_v40 = vld [vmem:[#allocation5 + $0x2e8] ss:$16 sps:$4 sm:$0xff]   ;;  %v3426_v41 = vld [vmem:[#allocation5 + $0x304] ss:$16 sps:$4 sm:$0xff]  }
  0xaa   :  { %1388 = vmatpush1.bf16.msra.mxu0 %v3344_v42  ;;  %1560 = vmatpush1.bf16.msra.mxu1 %v3345_v43  ;;  %v3429_v42 = vld [vmem:[#allocation5 + $0x30c] ss:$16 sps:$4 sm:$0xff]   ;;  %v3424_v43 = vld [vmem:[#allocation5 + $0x300] ss:$16 sps:$4 sm:$0xff]  }
  0xab   :  { %1389 = vmatprep.subr.bf16.mxu0 %v3346_v44  ;;  %1561 = vmatprep.subr.bf16.mxu1 %v3348_v45  ;;  %v3427_v44 = vld [vmem:[#allocation5 + $0x308] ss:$16 sps:$4 sm:$0xff]   ;;  %v3432_v45 = vld [vmem:[#allocation5 + $0x324] ss:$16 sps:$4 sm:$0xff]  }
  0xae   :  { %1390 = vmatpush1.bf16.msra.mxu0 %v3350_v48  ;;  %1562 = vmatpush1.bf16.msra.mxu1 %v3351_v49  ;;  %v3433_v48 = vld [vmem:[#allocation5 + $0x328] ss:$16 sps:$4 sm:$0xff]   ;;  %v3438_v49 = vld [vmem:[#allocation5 + $0x344] ss:$16 sps:$4 sm:$0xff]  }
  0xaf   :  { %1391 = vmatprep.subr.bf16.mxu0 %v3352_v51  ;;  %1563 = vmatprep.subr.bf16.mxu1 %v3354_v52  ;;  %v3436_v51 = vld [vmem:[#allocation5 + $0x340] ss:$16 sps:$4 sm:$0xff]   ;;  %v3439_v52 = vld [vmem:[#allocation5 + $0x348] ss:$16 sps:$4 sm:$0xff]  }
  0xb2   :  { %1392 = vmatpush1.bf16.msra.mxu0 %v3356_v53  ;;  %1564 = vmatpush1.bf16.msra.mxu1 %v3357_v54  ;;  %v3444_v53 = vld [vmem:[#allocation5 + $0x364] ss:$16 sps:$4 sm:$0xff]   ;;  %v3447_v54 = vld [vmem:[#allocation5 + $0x36c] ss:$16 sps:$4 sm:$0xff]  }
  0xb3   :  { %1393 = vmatprep.subr.bf16.mxu0 %v3358_v55  ;;  %1565 = vmatprep.subr.bf16.mxu1 %v3360_v56  ;;  %v3442_v55 = vld [vmem:[#allocation5 + $0x360] ss:$16 sps:$4 sm:$0xff]   ;;  %v3445_v56 = vld [vmem:[#allocation5 + $0x368] ss:$16 sps:$4 sm:$0xff]  }
  0xb6   :  { %1394 = vmatpush1.bf16.msra.mxu0 %v3362_v57  ;;  %1566 = vmatpush1.bf16.msra.mxu1 %v3363_v58  ;;  %v3450_v57 = vld [vmem:[#allocation5 + $0x384] ss:$16 sps:$4 sm:$0xff]   ;;  %v3453_v58 = vld [vmem:[#allocation5 + $0x38c] ss:$16 sps:$4 sm:$0xff]  }
  0xb7   :  { %1395 = vmatprep.subr.bf16.mxu0 %v3364_v59  ;;  %1567 = vmatprep.subr.bf16.mxu1 %v3366_v60  ;;  %v3448_v59 = vld [vmem:[#allocation5 + $0x380] ss:$16 sps:$4 sm:$0xff]   ;;  %v3451_v60 = vld [vmem:[#allocation5 + $0x388] ss:$16 sps:$4 sm:$0xff]  }
  0xba   :  { %1396 = vmatpush1.bf16.msra.mxu0 %v3368_v61  ;;  %1568 = vmatpush1.bf16.msra.mxu1 %v3369_v62  ;;  %v3456_v61 = vld [vmem:[#allocation5 + $0x3a4] ss:$16 sps:$4 sm:$0xff]   ;;  %v3459_v62 = vld [vmem:[#allocation5 + $0x3ac] ss:$16 sps:$4 sm:$0xff]  }
  0xbb   :  { %1397 = vmatprep.subr.bf16.mxu0 %v3370_v63  ;;  %1569 = vmatprep.subr.bf16.mxu1 %v3372_v0  ;;  %v3454_v63 = vld [vmem:[#allocation5 + $0x3a0] ss:$16 sps:$4 sm:$0xff]   ;;  %v3457_v0 = vld [vmem:[#allocation5 + $0x3a8] ss:$16 sps:$4 sm:$0xff]  }
  0xbe   :  { %1398 = vmatpush1.bf16.msra.mxu0 %v3374_v1  ;;  %1570 = vmatpush1.bf16.msra.mxu1 %v3375_v2  ;;  %v3462_v1 = vld [vmem:[#allocation5 + $0x3c4] ss:$16 sps:$4 sm:$0xff]   ;;  %v3465_v2 = vld [vmem:[#allocation5 + $0x3cc] ss:$16 sps:$4 sm:$0xff]  }
  0xbf   :  { %1410 = vmatprep.subr.bf16.mxu0 %v3378_v3  ;;  %1582 = vmatprep.subr.bf16.mxu1 %v3381_v6  ;;  %v3460_v3 = vld [vmem:[#allocation5 + $0x3c0] ss:$16 sps:$4 sm:$0xff]   ;;  %v3471_v6 = vld [vmem:[#allocation5 + $0x3ec] ss:$16 sps:$4 sm:$0xff]  }
  0xc1   :  { %1400 = vmatmul.mubr.bf16.vlgmr.msra.gmra.mrb[0].mxu0 %v158_v9  ;;  %1572 = vmatmul.mubr.bf16.vlgmr.msra.gmra.mrb[0].mxu1 %v158_v9  ;;  %v3474_v9 = vld [vmem:[#allocation5 + $0x404] ss:$16 sps:$4 sm:$0xff]  }
  0xc2   :  { %1411 = vmatpush1.bf16.msra.mxu0 %v3376_v7  ;;  %1583 = vmatpush1.bf16.msra.mxu1 %v3379_v8  ;;  %v3466_v7 = vld [vmem:[#allocation5 + $0x3e0] ss:$16 sps:$4 sm:$0xff]   ;;  %v3469_v8 = vld [vmem:[#allocation5 + $0x3e8] ss:$16 sps:$4 sm:$0xff]  }
  0xc3   :  { %1412 = vmatprep.subr.bf16.mxu0 %v3384_v10  ;;  %1584 = vmatprep.subr.bf16.mxu1 %v3387_v11  ;;  %v146_v10 = vld [vmem:[#allocation2 + $0x10] sm:$0xff]  ;;  %v153_v11 = vld [vmem:[#allocation2 + $0x48] sm:$0xff] }
  0xc4   :  { %1442 = vmatprep.mubr.bf16.mxu0 %v161_v36  ;;  %1614 = vmatprep.mubr.bf16.mxu1 %v161_v36  ;;  %v3507_v36 = vld [vmem:[#allocation5 + $0x4ac] ss:$16 sps:$4 sm:$0xff]  }
  0xc6   :  { %1413 = vmatpush1.bf16.msra.mxu0 %v3382_v12  ;;  %1585 = vmatpush1.bf16.msra.mxu1 %v3385_v13  ;;  %v3477_v12 = vld [vmem:[#allocation5 + $0x40c] ss:$16 sps:$4 sm:$0xff]   ;;  %v3472_v13 = vld [vmem:[#allocation5 + $0x400] ss:$16 sps:$4 sm:$0xff]  }
  0xc7   :  { %1414 = vmatprep.subr.bf16.mxu0 %v3390_v14  ;;  %1586 = vmatprep.subr.bf16.mxu1 %v3393_v15  ;;  %v3475_v14 = vld [vmem:[#allocation5 + $0x408] ss:$16 sps:$4 sm:$0xff]   ;;  %v160_v15 = vpack.c.bf16 %v153_v11, %v146_v10  ;;  %v3564_v11 = vld [vmem:[#allocation5 + $0x5e4] ss:$16 sps:$4 sm:$0xff]  }
  0xc8   :  { %v3559_v10 = vld [vmem:[#allocation5 + $0x5c8] ss:$16 sps:$4 sm:$0xff]  }
  0xca   :  { %1415 = vmatpush1.bf16.msra.mxu0 %v3388_v16  ;;  %1587 = vmatpush1.bf16.msra.mxu1 %v3391_v17  ;;  %v3480_v16 = vld [vmem:[#allocation5 + $0x424] ss:$16 sps:$4 sm:$0xff]   ;;  %v3483_v17 = vld [vmem:[#allocation5 + $0x42c] ss:$16 sps:$4 sm:$0xff]  }
  0xcb   :  { %1416 = vmatprep.subr.bf16.mxu0 %v3396_v18  ;;  %1588 = vmatprep.subr.bf16.mxu1 %v3399_v19  ;;  %v149_v18 = vld [vmem:[#allocation2 + $0x28] sm:$0xff]  ;;  %v3478_v19 = vld [vmem:[#allocation5 + $0x420] ss:$16 sps:$4 sm:$0xff]  }
  0xce   :  { %1417 = vmatpush1.bf16.msra.mxu0 %v3394_v20  ;;  %1589 = vmatpush1.bf16.msra.mxu1 %v3397_v21  ;;  %v3481_v20 = vld [vmem:[#allocation5 + $0x428] ss:$16 sps:$4 sm:$0xff]   ;;  %v156_v21 = vld [vmem:[#allocation2 + $0x60] sm:$0xff] }
  0xcf   :  { %1418 = vmatprep.subr.bf16.mxu0 %v3402_v22  ;;  %1590 = vmatprep.subr.bf16.mxu1 %v3405_v23  ;;  %v3486_v22 = vld [vmem:[#allocation5 + $0x444] ss:$16 sps:$4 sm:$0xff]   ;;  %v163_v23 = vpack.c.bf16 %v156_v21, %v149_v18  ;;  %v3573_v18 = vld [vmem:[#allocation5 + $0x60c] ss:$16 sps:$4 sm:$0xff]  }
  0xd2   :  { %1419 = vmatpush1.bf16.msra.mxu0 %v3400_v24  ;;  %1591 = vmatpush1.bf16.msra.mxu1 %v3403_v25  ;;  %v3489_v24 = vld [vmem:[#allocation5 + $0x44c] ss:$16 sps:$4 sm:$0xff]   ;;  %v3484_v25 = vld [vmem:[#allocation5 + $0x440] ss:$16 sps:$4 sm:$0xff]  }
  0xd3   :  { %1420 = vmatprep.subr.bf16.mxu0 %v3408_v26  ;;  %1592 = vmatprep.subr.bf16.mxu1 %v3411_v27  ;;  %v3487_v26 = vld [vmem:[#allocation5 + $0x448] ss:$16 sps:$4 sm:$0xff]   ;;  %v3492_v27 = vld [vmem:[#allocation5 + $0x464] ss:$16 sps:$4 sm:$0xff]  }
  0xd6   :  { %1421 = vmatpush1.bf16.msra.mxu0 %v3406_v28  ;;  %1593 = vmatpush1.bf16.msra.mxu1 %v3409_v29  ;;  %v3495_v28 = vld [vmem:[#allocation5 + $0x46c] ss:$16 sps:$4 sm:$0xff]   ;;  %v3490_v29 = vld [vmem:[#allocation5 + $0x460] ss:$16 sps:$4 sm:$0xff]  }
  0xd7   :  { %1422 = vmatprep.subr.bf16.mxu0 %v3414_v30  ;;  %1594 = vmatprep.subr.bf16.mxu1 %v3417_v31  ;;  %v3493_v30 = vld [vmem:[#allocation5 + $0x468] ss:$16 sps:$4 sm:$0xff]   ;;  %v3498_v31 = vld [vmem:[#allocation5 + $0x484] ss:$16 sps:$4 sm:$0xff]  }
  0xda   :  { %1423 = vmatpush1.bf16.msra.mxu0 %v3412_v34  ;;  %1595 = vmatpush1.bf16.msra.mxu1 %v3415_v35  ;;  %v3499_v34 = vld [vmem:[#allocation5 + $0x488] ss:$16 sps:$4 sm:$0xff]   ;;  %v3504_v35 = vld [vmem:[#allocation5 + $0x4a4] ss:$16 sps:$4 sm:$0xff]  }
  0xdb   :  { %1424 = vmatprep.subr.bf16.mxu0 %v3420_v37  ;;  %1596 = vmatprep.subr.bf16.mxu1 %v3423_v38  ;;  %v3502_v37 = vld [vmem:[#allocation5 + $0x4a0] ss:$16 sps:$4 sm:$0xff]   ;;  %v3505_v38 = vld [vmem:[#allocation5 + $0x4a8] ss:$16 sps:$4 sm:$0xff]  }
  0xde   :  { %1425 = vmatpush1.bf16.msra.mxu0 %v3418_v39  ;;  %1597 = vmatpush1.bf16.msra.mxu1 %v3421_v40  ;;  %v3510_v39 = vld [vmem:[#allocation5 + $0x4c4] ss:$16 sps:$4 sm:$0xff]   ;;  %v3513_v40 = vld [vmem:[#allocation5 + $0x4cc] ss:$16 sps:$4 sm:$0xff]  }
  0xdf   :  { %1426 = vmatprep.subr.bf16.mxu0 %v3426_v41  ;;  %1598 = vmatprep.subr.bf16.mxu1 %v3429_v42  ;;  %v3508_v41 = vld [vmem:[#allocation5 + $0x4c0] ss:$16 sps:$4 sm:$0xff]   ;;  %v3511_v42 = vld [vmem:[#allocation5 + $0x4c8] ss:$16 sps:$4 sm:$0xff]  }
  0xe2   :  { %1427 = vmatpush1.bf16.msra.mxu0 %v3424_v43  ;;  %1599 = vmatpush1.bf16.msra.mxu1 %v3427_v44  ;;  %v3516_v43 = vld [vmem:[#allocation5 + $0x4e4] ss:$16 sps:$4 sm:$0xff]   ;;  %v3519_v44 = vld [vmem:[#allocation5 + $0x4ec] ss:$16 sps:$4 sm:$0xff]  }
  0xe3   :  { %1428 = vmatprep.subr.bf16.mxu0 %v3432_v45  ;;  %1600 = vmatprep.subr.bf16.mxu1 %v3435_v46  ;;  %v3514_v45 = vld [vmem:[#allocation5 + $0x4e0] ss:$16 sps:$4 sm:$0xff]   ;;  %v3517_v46 = vld [vmem:[#allocation5 + $0x4e8] ss:$16 sps:$4 sm:$0xff]  }
  0xe6   :  { %1429 = vmatpush1.bf16.msra.mxu0 %v3430_v47  ;;  %1601 = vmatpush1.bf16.msra.mxu1 %v3433_v48  ;;  %v3522_v47 = vld [vmem:[#allocation5 + $0x504] ss:$16 sps:$4 sm:$0xff]   ;;  %v3525_v48 = vld [vmem:[#allocation5 + $0x50c] ss:$16 sps:$4 sm:$0xff]  }
  0xe7   :  { %1430 = vmatprep.subr.bf16.mxu0 %v3438_v49  ;;  %1602 = vmatprep.subr.bf16.mxu1 %v3441_v50  ;;  %v3520_v49 = vld [vmem:[#allocation5 + $0x500] ss:$16 sps:$4 sm:$0xff]   ;;  %v3523_v50 = vld [vmem:[#allocation5 + $0x508] ss:$16 sps:$4 sm:$0xff]  }
  0xea   :  { %1431 = vmatpush1.bf16.msra.mxu0 %v3436_v51  ;;  %1603 = vmatpush1.bf16.msra.mxu1 %v3439_v52  ;;  %v3528_v51 = vld [vmem:[#allocation5 + $0x524] ss:$16 sps:$4 sm:$0xff]   ;;  %v3531_v52 = vld [vmem:[#allocation5 + $0x52c] ss:$16 sps:$4 sm:$0xff]  }
  0xeb   :  { %1432 = vmatprep.subr.bf16.mxu0 %v3444_v53  ;;  %1604 = vmatprep.subr.bf16.mxu1 %v3447_v54  ;;  %v3526_v53 = vld [vmem:[#allocation5 + $0x520] ss:$16 sps:$4 sm:$0xff]   ;;  %v3529_v54 = vld [vmem:[#allocation5 + $0x528] ss:$16 sps:$4 sm:$0xff]  }
  0xee   :  { %1433 = vmatpush1.bf16.msra.mxu0 %v3442_v55  ;;  %1605 = vmatpush1.bf16.msra.mxu1 %v3445_v56  ;;  %v3534_v55 = vld [vmem:[#allocation5 + $0x544] ss:$16 sps:$4 sm:$0xff]   ;;  %v3537_v56 = vld [vmem:[#allocation5 + $0x54c] ss:$16 sps:$4 sm:$0xff]  }
  0xef   :  { %1434 = vmatprep.subr.bf16.mxu0 %v3450_v57  ;;  %1606 = vmatprep.subr.bf16.mxu1 %v3453_v58  ;;  %v3532_v57 = vld [vmem:[#allocation5 + $0x540] ss:$16 sps:$4 sm:$0xff]   ;;  %v3535_v58 = vld [vmem:[#allocation5 + $0x548] ss:$16 sps:$4 sm:$0xff]  }
  0xf2   :  { %1435 = vmatpush1.bf16.msra.mxu0 %v3448_v59  ;;  %1607 = vmatpush1.bf16.msra.mxu1 %v3451_v60  ;;  %v3540_v59 = vld [vmem:[#allocation5 + $0x564] ss:$16 sps:$4 sm:$0xff]   ;;  %v3543_v60 = vld [vmem:[#allocation5 + $0x56c] ss:$16 sps:$4 sm:$0xff]  }
  0xf3   :  { %1436 = vmatprep.subr.bf16.mxu0 %v3456_v61  ;;  %1608 = vmatprep.subr.bf16.mxu1 %v3459_v62  ;;  %v3538_v61 = vld [vmem:[#allocation5 + $0x560] ss:$16 sps:$4 sm:$0xff]   ;;  %v3541_v62 = vld [vmem:[#allocation5 + $0x568] ss:$16 sps:$4 sm:$0xff]  }
  0xf6   :  { %1437 = vmatpush1.bf16.msra.mxu0 %v3454_v63  ;;  %1609 = vmatpush1.bf16.msra.mxu1 %v3457_v0  ;;  %v3546_v63 = vld [vmem:[#allocation5 + $0x584] ss:$16 sps:$4 sm:$0xff]   ;;  %v3549_v0 = vld [vmem:[#allocation5 + $0x58c] ss:$16 sps:$4 sm:$0xff]  }
  0xf7   :  { %1438 = vmatprep.subr.bf16.mxu0 %v3462_v1  ;;  %1610 = vmatprep.subr.bf16.mxu1 %v3465_v2  ;;  %v3544_v1 = vld [vmem:[#allocation5 + $0x580] ss:$16 sps:$4 sm:$0xff]   ;;  %v3547_v2 = vld [vmem:[#allocation5 + $0x588] ss:$16 sps:$4 sm:$0xff]  }
  0xfa   :  { %1439 = vmatpush1.bf16.msra.mxu0 %v3460_v3  ;;  %1611 = vmatpush1.bf16.msra.mxu1 %v3463_v4  ;;  %v3552_v3 = vld [vmem:[#allocation5 + $0x5a4] ss:$16 sps:$4 sm:$0xff]   ;;  %v3555_v4 = vld [vmem:[#allocation5 + $0x5ac] ss:$16 sps:$4 sm:$0xff]  }
  0xfb   :  { %1440 = vmatprep.subr.bf16.mxu0 %v3468_v5  ;;  %1612 = vmatprep.subr.bf16.mxu1 %v3471_v6  ;;  %v3550_v5 = vld [vmem:[#allocation5 + $0x5a0] ss:$16 sps:$4 sm:$0xff]   ;;  %v3553_v6 = vld [vmem:[#allocation5 + $0x5a8] ss:$16 sps:$4 sm:$0xff]  }
  0xfe   :  { %1441 = vmatpush1.bf16.msra.mxu0 %v3466_v7  ;;  %1613 = vmatpush1.bf16.msra.mxu1 %v3469_v8  ;;  %v3558_v7 = vld [vmem:[#allocation5 + $0x5c4] ss:$16 sps:$4 sm:$0xff]   ;;  %v3561_v8 = vld [vmem:[#allocation5 + $0x5cc] ss:$16 sps:$4 sm:$0xff]  }
  0xff   :  { %1453 = vmatprep.subr.bf16.mxu0 %v3474_v9  ;;  %1625 = vmatprep.subr.bf16.mxu1 %v3477_v12  ;;  %v3556_v9 = vld [vmem:[#allocation5 + $0x5c0] ss:$16 sps:$4 sm:$0xff]   ;;  %v3567_v12 = vld [vmem:[#allocation5 + $0x5ec] ss:$16 sps:$4 sm:$0xff]  }
 0x101   :  { %1443 = vmatmul.mubr.bf16.vlgmr.msra.gmra.mrb[0].mxu0 %v160_v15  ;;  %1615 = vmatmul.mubr.bf16.vlgmr.msra.gmra.mrb[0].mxu1 %v160_v15  ;;  %v148_v15 = vld [vmem:[#allocation2 + $0x20] sm:$0xff] }
 0x102   :  { %1454 = vmatpush1.bf16.msra.mxu0 %v3472_v13  ;;  %1626 = vmatpush1.bf16.msra.mxu1 %v3475_v14  ;;  %v3562_v13 = vld [vmem:[#allocation5 + $0x5e0] ss:$16 sps:$4 sm:$0xff]   ;;  %v3565_v14 = vld [vmem:[#allocation5 + $0x5e8] ss:$16 sps:$4 sm:$0xff]  }
 0x103   :  { %1455 = vmatprep.subr.bf16.mxu0 %v3480_v16  ;;  %1627 = vmatprep.subr.bf16.mxu1 %v3483_v17  ;;  %v155_v16 = vld [vmem:[#allocation2 + $0x58] sm:$0xff]  ;;  %v3570_v17 = vld [vmem:[#allocation5 + $0x604] ss:$16 sps:$4 sm:$0xff]  }
 0x104   :  { %1485 = vmatprep.mubr.bf16.mxu0 %v163_v23  ;;  %1657 = vmatprep.mubr.bf16.mxu1 %v163_v23  ;;  %v162_v21 = vpack.c.bf16 %v155_v16, %v148_v15  ;;  %v3935_v23 = vmov 0  }
 0x106   :  { %1456 = vmatpush1.bf16.msra.mxu0 %v3478_v19  ;;  %1628 = vmatpush1.bf16.msra.mxu1 %v3481_v20  ;;  %v3568_v19 = vld [vmem:[#allocation5 + $0x600] ss:$16 sps:$4 sm:$0xff]   ;;  %v3571_v20 = vld [vmem:[#allocation5 + $0x608] ss:$16 sps:$4 sm:$0xff]  }
 0x107   :  { %1457 = vmatprep.subr.bf16.mxu0 %v3486_v22  ;;  %1629 = vmatprep.subr.bf16.mxu1 %v3489_v24  ;;  %v3576_v22 = vld [vmem:[#allocation7 + $0x4] ss:$8 sps:$4 sm:$0xff]  }
 0x108   :  { %v150_v24 = vld [vmem:[#allocation2 + $0x30] sm:$0xff] }
 0x10a   :  { %1458 = vmatpush1.bf16.msra.mxu0 %v3484_v25  ;;  %1630 = vmatpush1.bf16.msra.mxu1 %v3487_v26  ;;  %v157_v25 = vld [vmem:[#allocation2 + $0x68] sm:$0xff] }
 0x10b   :  { %1459 = vmatprep.subr.bf16.mxu0 %v3492_v27  ;;  %1631 = vmatprep.subr.bf16.mxu1 %v3495_v28  ;;  %v164_v26 = vpack.c.bf16 %v157_v25, %v150_v24  ;;  %v3574_v27 = vld [vmem:[#allocation7] ss:$8 sps:$4 sm:$0xff]   ;;  %v3579_v28 = vld [vmem:[#allocation7 + $0x14] ss:$8 sps:$4 sm:$0xff]  }
 0x10e   :  { %1460 = vmatpush1.bf16.msra.mxu0 %v3490_v29  ;;  %1632 = vmatpush1.bf16.msra.mxu1 %v3493_v30  ;;  %v3577_v29 = vld [vmem:[#allocation7 + $0x10] ss:$8 sps:$4 sm:$0xff]   ;;  %v3582_v30 = vld [vmem:[#allocation7 + $0x24] ss:$8 sps:$4 sm:$0xff]  }
 0x10f   :  { %1461 = vmatprep.subr.bf16.mxu0 %v3498_v31  ;;  %1633 = vmatprep.subr.bf16.mxu1 %v3501_v32  ;;  %v3580_v31 = vld [vmem:[#allocation7 + $0x20] ss:$8 sps:$4 sm:$0xff]   ;;  %v3585_v32 = vld [vmem:[#allocation7 + $0x34] ss:$8 sps:$4 sm:$0xff]  }
 0x112   :  { %1462 = vmatpush1.bf16.msra.mxu0 %v3496_v33  ;;  %1634 = vmatpush1.bf16.msra.mxu1 %v3499_v34  ;;  %v3583_v33 = vld [vmem:[#allocation7 + $0x30] ss:$8 sps:$4 sm:$0xff]   ;;  %v3588_v34 = vld [vmem:[#allocation7 + $0x44] ss:$8 sps:$4 sm:$0xff]  }
 0x113   :  { %1463 = vmatprep.subr.bf16.mxu0 %v3504_v35  ;;  %1635 = vmatprep.subr.bf16.mxu1 %v3507_v36  ;;  %v3586_v35 = vld [vmem:[#allocation7 + $0x40] ss:$8 sps:$4 sm:$0xff]   ;;  %v3591_v36 = vld [vmem:[#allocation7 + $0x54] ss:$8 sps:$4 sm:$0xff]  }
 0x116   :  { %1464 = vmatpush1.bf16.msra.mxu0 %v3502_v37  ;;  %1636 = vmatpush1.bf16.msra.mxu1 %v3505_v38  ;;  %v3589_v37 = vld [vmem:[#allocation7 + $0x50] ss:$8 sps:$4 sm:$0xff]   ;;  %v3594_v38 = vld [vmem:[#allocation7 + $0x64] ss:$8 sps:$4 sm:$0xff]  }
 0x117   :  { %1465 = vmatprep.subr.bf16.mxu0 %v3510_v39  ;;  %1637 = vmatprep.subr.bf16.mxu1 %v3513_v40  ;;  %v3592_v39 = vld [vmem:[#allocation7 + $0x60] ss:$8 sps:$4 sm:$0xff]   ;;  %v3597_v40 = vld [vmem:[#allocation7 + $0x74] ss:$8 sps:$4 sm:$0xff]  }
 0x11a   :  { %1466 = vmatpush1.bf16.msra.mxu0 %v3508_v41  ;;  %1638 = vmatpush1.bf16.msra.mxu1 %v3511_v42  ;;  %v3595_v41 = vld [vmem:[#allocation7 + $0x70] ss:$8 sps:$4 sm:$0xff]   ;;  %v3600_v42 = vld [vmem:[#allocation7 + $0x84] ss:$8 sps:$4 sm:$0xff]  }
 0x11b   :  { %1467 = vmatprep.subr.bf16.mxu0 %v3516_v43  ;;  %1639 = vmatprep.subr.bf16.mxu1 %v3519_v44  ;;  %v3598_v43 = vld [vmem:[#allocation7 + $0x80] ss:$8 sps:$4 sm:$0xff]   ;;  %v3603_v44 = vld [vmem:[#allocation7 + $0x94] ss:$8 sps:$4 sm:$0xff]  }
 0x11e   :  { %1468 = vmatpush1.bf16.msra.mxu0 %v3514_v45  ;;  %1640 = vmatpush1.bf16.msra.mxu1 %v3517_v46  ;;  %v3601_v45 = vld [vmem:[#allocation7 + $0x90] ss:$8 sps:$4 sm:$0xff]   ;;  %v3606_v46 = vld [vmem:[#allocation7 + $0xa4] ss:$8 sps:$4 sm:$0xff]  }
 0x11f   :  { %1469 = vmatprep.subr.bf16.mxu0 %v3522_v47  ;;  %1641 = vmatprep.subr.bf16.mxu1 %v3525_v48  ;;  %v3604_v47 = vld [vmem:[#allocation7 + $0xa0] ss:$8 sps:$4 sm:$0xff]   ;;  %v3609_v48 = vld [vmem:[#allocation7 + $0xb4] ss:$8 sps:$4 sm:$0xff]  }
 0x122   :  { %1470 = vmatpush1.bf16.msra.mxu0 %v3520_v49  ;;  %1642 = vmatpush1.bf16.msra.mxu1 %v3523_v50  ;;  %v3607_v49 = vld [vmem:[#allocation7 + $0xb0] ss:$8 sps:$4 sm:$0xff]   ;;  %v3612_v50 = vld [vmem:[#allocation7 + $0xc4] ss:$8 sps:$4 sm:$0xff]  }
 0x123   :  { %1471 = vmatprep.subr.bf16.mxu0 %v3528_v51  ;;  %1643 = vmatprep.subr.bf16.mxu1 %v3531_v52  ;;  %v3610_v51 = vld [vmem:[#allocation7 + $0xc0] ss:$8 sps:$4 sm:$0xff]   ;;  %v3615_v52 = vld [vmem:[#allocation7 + $0xd4] ss:$8 sps:$4 sm:$0xff]  }
 0x126   :  { %1472 = vmatpush1.bf16.msra.mxu0 %v3526_v53  ;;  %1644 = vmatpush1.bf16.msra.mxu1 %v3529_v54  ;;  %v3613_v53 = vld [vmem:[#allocation7 + $0xd0] ss:$8 sps:$4 sm:$0xff]   ;;  %v3618_v54 = vld [vmem:[#allocation7 + $0xe4] ss:$8 sps:$4 sm:$0xff]  }
 0x127   :  { %1473 = vmatprep.subr.bf16.mxu0 %v3534_v55  ;;  %1645 = vmatprep.subr.bf16.mxu1 %v3537_v56  ;;  %v3616_v55 = vld [vmem:[#allocation7 + $0xe0] ss:$8 sps:$4 sm:$0xff]   ;;  %v3621_v56 = vld [vmem:[#allocation7 + $0xf4] ss:$8 sps:$4 sm:$0xff]  }
 0x12a   :  { %1474 = vmatpush1.bf16.msra.mxu0 %v3532_v57  ;;  %1646 = vmatpush1.bf16.msra.mxu1 %v3535_v58  ;;  %v3619_v57 = vld [vmem:[#allocation7 + $0xf0] ss:$8 sps:$4 sm:$0xff]   ;;  %v3624_v58 = vld [vmem:[#allocation7 + $0x104] ss:$8 sps:$4 sm:$0xff]  }
 0x12b   :  { %1475 = vmatprep.subr.bf16.mxu0 %v3540_v59  ;;  %1647 = vmatprep.subr.bf16.mxu1 %v3543_v60  ;;  %v3670_v59 = vld [vmem:[#allocation8 + $0x40] sm:$0xff]  }
 0x12c   :  { %v3671_v60 = vld [vmem:[#allocation8] sm:$0xff]  }
 0x12e   :  { %1476 = vmatpush1.bf16.msra.mxu0 %v3538_v61  ;;  %1648 = vmatpush1.bf16.msra.mxu1 %v3541_v62  ;;  %v3672_v61 = vld [vmem:[#allocation8 + $0x48] sm:$0xff]  }
 0x12f   :  { %1477 = vmatprep.subr.bf16.mxu0 %v3546_v63  ;;  %1649 = vmatprep.subr.bf16.mxu1 %v3549_v0  ;;  %v3673_v62 = vld [vmem:[#allocation8 + $0x8] sm:$0xff]   ;;  %v3674_v63 = vld [vmem:[#allocation8 + $0x50] sm:$0xff]  }
 0x130   :  { %v3675_v0 = vld [vmem:[#allocation8 + $0x10] sm:$0xff]  }
 0x132   :  { %1478 = vmatpush1.bf16.msra.mxu0 %v3544_v1  ;;  %1650 = vmatpush1.bf16.msra.mxu1 %v3547_v2  ;;  %v3676_v1 = vld [vmem:[#allocation8 + $0x58] sm:$0xff]  }
 0x133   :  { %1479 = vmatprep.subr.bf16.mxu0 %v3552_v3  ;;  %1651 = vmatprep.subr.bf16.mxu1 %v3555_v4  ;;  %v3677_v2 = vld [vmem:[#allocation8 + $0x18] sm:$0xff]   ;;  %v3678_v3 = vld [vmem:[#allocation8 + $0x60] sm:$0xff]  }
 0x134   :  { %v3679_v4 = vld [vmem:[#allocation8 + $0x20] sm:$0xff]  }
 0x136   :  { %1480 = vmatpush1.bf16.msra.mxu0 %v3550_v5  ;;  %1652 = vmatpush1.bf16.msra.mxu1 %v3553_v6  ;;  %v3680_v5 = vld [vmem:[#allocation8 + $0x68] sm:$0xff]   ;;  %v363_v6 = vlaneseq }
 0x137   :  { %1481 = vmatprep.subr.bf16.mxu0 %v3558_v7  ;;  %1653 = vmatprep.subr.bf16.mxu1 %v3561_v8 }
 0x138   :  { %v4118_v7 = vshrl.u32 %v363_v6, 7  ;;  %v3663_v6 = vld [vmem:[#allocation7 + $0x1d4] ss:$8 sps:$4 sm:$0xff]  }
 0x13a   :  { %1482 = vmatpush1.bf16.msra.mxu0 %v3556_v9  ;;  %1654 = vmatpush1.bf16.msra.mxu1 %v3559_v10  ;;  %v365_v8 = vsub.s32 0, %v4118_v7  ;;  %v373_v9 = vsub.s32 2, %v4118_v7  ;;  %v361_v10 = vld [vmem:[%s4215_s2] sm:$0xf] }
 0x13b   :  { %1483 = vmatprep.subr.bf16.mxu0 %v3564_v11  ;;  %1655 = vmatprep.subr.bf16.mxu1 %v3567_v12  ;;  %v369_v11 = vsub.s32 1, %v4118_v7  ;;  %v377_v12 = vsub.s32 3, %v4118_v7  ;;  %v3687_v7 = vld [vmem:[#allocation10 + $0x8] sm:$0xff]  }
 0x13d   :  { %v370_v15 = vrot.slane %v361_v10, %v369_v11  ;;  %v378_v16 = vrot.slane %v361_v10, %v377_v12  ;;  %v3664_v12 = vld [vmem:[#allocation7 + $0x1e0] ss:$8 sps:$4 sm:$0xff]  }
 0x13e   :  { %1484 = vmatpush1.bf16.msra.mxu0 %v3562_v13  ;;  %1656 = vmatpush1.bf16.msra.mxu1 %v3565_v14  ;;  %v366_v13 = vrot.slane %v361_v10, %v365_v8  ;;  %v374_v14 = vrot.slane %v361_v10, %v373_v9  ;;  %v3661_v9 = vld [vmem:[#allocation7 + $0x1d0] ss:$8 sps:$4 sm:$0xff]   ;;  %v3666_v10 = vld [vmem:[#allocation7 + $0x1e4] ss:$8 sps:$4 sm:$0xff]  }
 0x13f   :  { %1496 = vmatprep.subr.bf16.mxu0 %v3570_v17  ;;  %1668 = vmatprep.subr.bf16.mxu1 %v3573_v18 }
 0x141   :  { %1486 = vmatmul.mubr.bf16.vlgmr.msra.gmra.mrb[0].mxu0 %v162_v21  ;;  %1658 = vmatmul.mubr.bf16.vlgmr.msra.gmra.mrb[0].mxu1 %v162_v21 }
 0x142   :  { %1497 = vmatpush1.bf16.msra.mxu0 %v3568_v19  ;;  %1669 = vmatpush1.bf16.msra.mxu1 %v3571_v20 }
 0x143   :  { %1528 = vmatprep.mubr.bf16.mxu0 %v3935_v23  ;;  %1700 = vmatprep.mubr.bf16.mxu1 %v3935_v23 }
 0x144   :  { %2119 = vmatprep.subr.bf16.mxu0 %v3576_v22  ;;  %3111 = vmatprep.subr.bf16.mxu1 %v3670_v59  ;;  %v3643_v59 = vld [vmem:[#allocation7 + $0x170] ss:$8 sps:$4 sm:$0xff]  }
 0x14d   :  { %2983 = vmatmul.mubr.msk.bf16.vlgmr.msra.gmra.mrb[0].mxu0 %vm1363_vm0, %v164_v26  ;;  %2984 = vmatmul.mubr.msk.bf16.vlgmr.msra.gmra.mrb[0].mxu1 %vm1363_vm0, %v164_v26 }
 0x14e   :  { %2120 = vmatpush1.bf16.msra.mxu0 %v3574_v27  ;;  %3112 = vmatpush3.bf16.msra.mxu1 %v3671_v60  ;;  %v3648_v60 = vld [vmem:[#allocation7 + $0x184] ss:$8 sps:$4 sm:$0xff]  }
 0x14f   :  { %2121 = vmatprep.subr.bf16.mxu0 %v3579_v28  ;;  %3113 = vmatprep.subr.bf16.mxu1 %v3672_v61  ;;  %v3646_v61 = vld [vmem:[#allocation7 + $0x180] ss:$8 sps:$4 sm:$0xff]  }
 0x152   :  { %2122 = vmatpush1.bf16.msra.mxu0 %v3577_v29  ;;  %3114 = vmatpush3.bf16.msra.mxu1 %v3673_v62  ;;  %v3651_v62 = vld [vmem:[#allocation7 + $0x194] ss:$8 sps:$4 sm:$0xff]  }
 0x153   :  { %2123 = vmatprep.subr.bf16.mxu0 %v3582_v30  ;;  %3115 = vmatprep.subr.bf16.mxu1 %v3674_v63  ;;  %v3649_v63 = vld [vmem:[#allocation7 + $0x190] ss:$8 sps:$4 sm:$0xff]  }
 0x156   :  { %2124 = vmatpush1.bf16.msra.mxu0 %v3580_v31  ;;  %3116 = vmatpush3.bf16.msra.mxu1 %v3675_v0  ;;  %v3654_v0 = vld [vmem:[#allocation7 + $0x1a4] ss:$8 sps:$4 sm:$0xff]  }
 0x157   :  { %2125 = vmatprep.subr.bf16.mxu0 %v3585_v32  ;;  %3117 = vmatprep.subr.bf16.mxu1 %v3676_v1  ;;  %v3652_v1 = vld [vmem:[#allocation7 + $0x1a0] ss:$8 sps:$4 sm:$0xff]  }
 0x15a   :  { %2126 = vmatpush1.bf16.msra.mxu0 %v3583_v33  ;;  %3118 = vmatpush3.bf16.msra.mxu1 %v3677_v2  ;;  %v3657_v2 = vld [vmem:[#allocation7 + $0x1b4] ss:$8 sps:$4 sm:$0xff]  }
 0x15b   :  { %2127 = vmatprep.subr.bf16.mxu0 %v3588_v34  ;;  %3119 = vmatprep.subr.bf16.mxu1 %v3678_v3  ;;  %v3655_v3 = vld [vmem:[#allocation7 + $0x1b0] ss:$8 sps:$4 sm:$0xff]  }
 0x15e   :  { %2128 = vmatpush1.bf16.msra.mxu0 %v3586_v35  ;;  %3120 = vmatpush3.bf16.msra.mxu1 %v3679_v4  ;;  %v3660_v4 = vld [vmem:[#allocation7 + $0x1c4] ss:$8 sps:$4 sm:$0xff]  }
 0x15f   :  { %2129 = vmatprep.subr.bf16.mxu0 %v3591_v36  ;;  %3121 = vmatprep.subr.bf16.mxu1 %v3680_v5  ;;  %v3658_v5 = vld [vmem:[#allocation7 + $0x1c0] ss:$8 sps:$4 sm:$0xff]  }
 0x162   :  { %2130 = vmatpush1.bf16.msra.mxu0 %v3589_v37 }
 0x163   :  { %2131 = vmatprep.subr.bf16.mxu0 %v3594_v38 }
 0x166   :  { %2132 = vmatpush1.bf16.msra.mxu0 %v3592_v39 }
 0x167   :  { %2133 = vmatprep.subr.bf16.mxu0 %v3597_v40 }
 0x16a   :  { %2134 = vmatpush1.bf16.msra.mxu0 %v3595_v41 }
 0x16b   :  { %2135 = vmatprep.subr.bf16.mxu0 %v3600_v42 }
 0x16e   :  { %2136 = vmatpush1.bf16.msra.mxu0 %v3598_v43 }
 0x16f   :  { %2137 = vmatprep.subr.bf16.mxu0 %v3603_v44 }
 0x172   :  { %2138 = vmatpush1.bf16.msra.mxu0 %v3601_v45  ;;  %v3622_v45 = vld [vmem:[#allocation7 + $0x100] ss:$8 sps:$4 sm:$0xff]  }
 0x173   :  { %2139 = vmatprep.subr.bf16.mxu0 %v3606_v46  ;;  %v3627_v46 = vld [vmem:[#allocation7 + $0x114] ss:$8 sps:$4 sm:$0xff]  }
 0x176   :  { %2140 = vmatpush1.bf16.msra.mxu0 %v3604_v47  ;;  %v3625_v47 = vld [vmem:[#allocation7 + $0x110] ss:$8 sps:$4 sm:$0xff]  }
 0x177   :  { %2141 = vmatprep.subr.bf16.mxu0 %v3609_v48  ;;  %v3630_v48 = vld [vmem:[#allocation7 + $0x124] ss:$8 sps:$4 sm:$0xff]  }
 0x17a   :  { %2142 = vmatpush1.bf16.msra.mxu0 %v3607_v49  ;;  %v3628_v49 = vld [vmem:[#allocation7 + $0x120] ss:$8 sps:$4 sm:$0xff]  }
 0x17b   :  { %2143 = vmatprep.subr.bf16.mxu0 %v3612_v50  ;;  %v3633_v50 = vld [vmem:[#allocation7 + $0x134] ss:$8 sps:$4 sm:$0xff]  }
 0x17e   :  { %2144 = vmatpush1.bf16.msra.mxu0 %v3610_v51  ;;  %v3631_v51 = vld [vmem:[#allocation7 + $0x130] ss:$8 sps:$4 sm:$0xff]  }
 0x17f   :  { %2145 = vmatprep.subr.bf16.mxu0 %v3615_v52  ;;  %v3636_v52 = vld [vmem:[#allocation7 + $0x144] ss:$8 sps:$4 sm:$0xff]  }
 0x182   :  { %2146 = vmatpush1.bf16.msra.mxu0 %v3613_v53  ;;  %v3634_v53 = vld [vmem:[#allocation7 + $0x140] ss:$8 sps:$4 sm:$0xff]  }
 0x183   :  { %2147 = vmatprep.subr.bf16.mxu0 %v3618_v54  ;;  %v3639_v54 = vld [vmem:[#allocation7 + $0x154] ss:$8 sps:$4 sm:$0xff]  }
 0x186   :  { %2148 = vmatpush1.bf16.msra.mxu0 %v3616_v55  ;;  %v3637_v55 = vld [vmem:[#allocation7 + $0x150] ss:$8 sps:$4 sm:$0xff]  }
 0x187   :  { %2149 = vmatprep.subr.bf16.mxu0 %v3621_v56  ;;  %v3642_v56 = vld [vmem:[#allocation7 + $0x164] ss:$8 sps:$4 sm:$0xff]  }
 0x18a   :  { %2150 = vmatpush1.bf16.msra.mxu0 %v3619_v57  ;;  %v3640_v57 = vld [vmem:[#allocation7 + $0x160] ss:$8 sps:$4 sm:$0xff]  }
 0x18b   :  { %2162 = vmatprep.subr.bf16.mxu0 %v3624_v58  ;;  %v3645_v58 = vld [vmem:[#allocation7 + $0x174] ss:$8 sps:$4 sm:$0xff]  }
 0x220   :  { %v1530_v17 = vpop.f32.mrb[0].mxu0  ;;  %v1702_v18 = vpop.f32.mrb[0].mxu1 }
 0x221   :  { %v3220_v19 = vadd.f32 %v1530_v17, %v366_v13  ;;  %v3224_v20 = vadd.f32 %v1702_v18, %v374_v14  ;;  %v1532_v21 = vpop.f32.mrb[1].mxu0  ;;  %v1704_v22 = vpop.f32.mrb[1].mxu1  ;;  %v3683_v17 = vld [vmem:[#allocation8 + $0x30] sm:$0xff]   ;;  %v3684_v18 = vld [vmem:[#allocation8 + $0x78] sm:$0xff]  }
 0x222   :  { %v3221_v23 = vadd.f32 %v1532_v21, %v370_v15  ;;  %v3225_v24 = vadd.f32 %v1704_v22, %v378_v16  ;;  %v1534_v25 = vpop.f32.mrb[2].mxu0  ;;  %v1706_v26 = vpop.f32.mrb[2].mxu1  ;;  %v1787_v21 = vld [vmem:[%s4217_s4] sm:$0x3] }
 0x223   :  { %v3222_v27 = vadd.f32 %v1534_v25, %v366_v13  ;;  %v3226_v28 = vadd.f32 %v1706_v26, %v374_v14  ;;  %v1536_v29 = vpop.f32.mrb[3].mxu0  ;;  %v1708_v30 = vpop.f32.mrb[3].mxu1  ;;  %v1711_v33 = vmax.f32 %v3220_v19, 0.0  ;;  %v1713_v34 = vmax.f32 %v3224_v20, 0.0  ;;  %v3669_v13 = vld [vmem:[#allocation7 + $0x1f4] ss:$8 sps:$4 sm:$0xff]  }
 0x224   :  { %v3223_v31 = vadd.f32 %v1536_v29, %v370_v15  ;;  %v3227_v32 = vadd.f32 %v1708_v30, %v378_v16  ;;  %v1712_v37 = vmax.f32 %v3221_v23, 0.0  ;;  %v1714_v38 = vmax.f32 %v3225_v24, 0.0  ;;  %v3667_v14 = vld [vmem:[#allocation7 + $0x1f0] ss:$8 sps:$4 sm:$0xff]   ;;  %v3681_v15 = vld [vmem:[#allocation8 + $0x28] sm:$0xff]  }
 0x225   :  { %v1715_v35 = vmax.f32 %v3222_v27, 0.0  ;;  %v1717_v36 = vmax.f32 %v3226_v28, 0.0  ;;  %3122 = vmatpush3.bf16.msra.mxu1 %v3681_v15  ;;  %v3682_v16 = vld [vmem:[#allocation8 + $0x70] sm:$0xff]   ;;  %v3685_v19 = vld [vmem:[#allocation8 + $0x38] sm:$0xff]   ;;  %v3936_v20 = vmov 0.0   ;;  %v1792_v22 = vrot.slane %v1787_v21, %v365_v8 }
 0x226   :  { %v1716_v39 = vmax.f32 %v3223_v31, 0.0  ;;  %v1718_v40 = vmax.f32 %v3227_v32, 0.0  ;;  %3123 = vmatprep.subr.bf16.mxu1 %v3682_v16  ;;  %v1796_v23 = vrot.slane %v1787_v21, %v369_v11  ;;  %v3688_v8 = vld [vmem:[#allocation10 + $0x10] sm:$0xff]   ;;  %v3689_v11 = vld [vmem:[#allocation10 + $0x18] sm:$0xff]   ;;  %v3706_v16 = vld [vmem:[#allocation13 + $0x20] sm:$0xff]  }
 0x227   :  { %v1719_v41 = vpack.c.bf16 %v1715_v35, %v1711_v33  ;;  %v4131_v42 = vpack.c.bf16 %v1717_v36, %v1713_v34  ;;  %v3705_v15 = vld [vmem:[#allocation13 + $0x18] sm:$0xff]   ;;  %v3075_v21 = vld [vmem:[%s4223_s10] ss:$0 sm:$0xff] }
 0x228   :  { %v1720_v43 = vpack.c.bf16 %v1716_v39, %v1712_v37  ;;  %v1722_v44 = vpack.c.bf16 %v1718_v40, %v1714_v38  ;;  %v3686_v38 = vld [vmem:[#allocation10] sm:$0xff]   ;;  %v3691_v40 = vld [vmem:[#allocation10 + $0x28] sm:$0xff]  }
 0x229   :  { %3124 = vmatpush3.bf16.msra.mxu1 %v3683_v17  ;;  %v3690_v39 = vld [vmem:[#allocation10 + $0x20] sm:$0xff]   ;;  %v3707_v17 = vld [vmem:[#allocation13 + $0x28] sm:$0xff]  }
 0x22a   :  { %2151 = vmatprep.mubr.bf16.mxu0 %v1720_v43  ;;  %3125 = vmatprep.subr.bf16.mxu1 %v3684_v18  ;;  %v3708_v18 = vld [vmem:[#allocation13 + $0x30] sm:$0xff]  }
 0x22b   :  { %2152 = vmatmul.mubr.bf16.vlgmr.msra.gmra.mrb[4].mxu0 %v1719_v41  ;;  %v3692_v41 = vld [vmem:[#allocation10 + $0x30] sm:$0xff]  }
 0x22c   :  { %2163 = vmatpush1.bf16.msra.mxu0 %v3622_v45  ;;  %2194 = vmatprep.mubr.bf16.mxu0 %v1722_v44  ;;  %v3049_v44 = vld [vmem:[%s4219_s6] ss:$0 sm:$0xff] }
 0x22d   :  { %2164 = vmatprep.subr.bf16.mxu0 %v3627_v46  ;;  %3126 = vmatpush3.bf16.msra.mxu1 %v3685_v19  ;;  %v3709_v19 = vld [vmem:[#allocation13 + $0x38] sm:$0xff]  }
 0x22e   :  { %3160 = vmatprep.subr.bf16.mxu1 %v3936_v20 }
 0x230   :  { %2165 = vmatpush1.bf16.msra.mxu0 %v3625_v47 }
 0x231   :  { %2166 = vmatprep.subr.bf16.mxu0 %v3630_v48 }
 0x234   :  { %2167 = vmatpush1.bf16.msra.mxu0 %v3628_v49 }
 0x235   :  { %2168 = vmatprep.subr.bf16.mxu0 %v3633_v50 }
 0x238   :  { %2169 = vmatpush1.bf16.msra.mxu0 %v3631_v51 }
 0x239   :  { %2170 = vmatprep.subr.bf16.mxu0 %v3636_v52 }
 0x23c   :  { %2171 = vmatpush1.bf16.msra.mxu0 %v3634_v53 }
 0x23d   :  { %2172 = vmatprep.subr.bf16.mxu0 %v3639_v54  ;;  %v3694_v54 = vld [vmem:[#allocation11] sm:$0xff]  }
 0x240   :  { %2173 = vmatpush1.bf16.msra.mxu0 %v3637_v55 }
 0x241   :  { %2174 = vmatprep.subr.bf16.mxu0 %v3642_v56  ;;  %v3695_v56 = vld [vmem:[#allocation11 + $0x8] sm:$0xff]  }
 0x244   :  { %2175 = vmatpush1.bf16.msra.mxu0 %v3640_v57  ;;  %v3696_v57 = vld [vmem:[#allocation11 + $0x10] sm:$0xff]  }
 0x245   :  { %2176 = vmatprep.subr.bf16.mxu0 %v3645_v58  ;;  %v3697_v58 = vld [vmem:[#allocation11 + $0x18] sm:$0xff]  }
 0x248   :  { %2177 = vmatpush1.bf16.msra.mxu0 %v3643_v59  ;;  %v3698_v59 = vld [vmem:[#allocation11 + $0x20] sm:$0xff]  }
 0x249   :  { %2178 = vmatprep.subr.bf16.mxu0 %v3648_v60  ;;  %v3699_v60 = vld [vmem:[#allocation11 + $0x28] sm:$0xff]  }
 0x24c   :  { %2179 = vmatpush1.bf16.msra.mxu0 %v3646_v61  ;;  %v3700_v61 = vld [vmem:[#allocation11 + $0x30] sm:$0xff]  }
 0x24d   :  { %2180 = vmatprep.subr.bf16.mxu0 %v3651_v62  ;;  %v3701_v62 = vld [vmem:[#allocation11 + $0x38] sm:$0xff]  }
 0x250   :  { %2181 = vmatpush1.bf16.msra.mxu0 %v3649_v63  ;;  %v3066_v63 = vld [vmem:[%s4221_s8] ss:$0 sm:$0xff] }
 0x251   :  { %2182 = vmatprep.subr.bf16.mxu0 %v3654_v0 }
 0x254   :  { %2183 = vmatpush1.bf16.msra.mxu0 %v3652_v1 }
 0x255   :  { %2184 = vmatprep.subr.bf16.mxu0 %v3657_v2 }
 0x258   :  { %2185 = vmatpush1.bf16.msra.mxu0 %v3655_v3 }
 0x259   :  { %2186 = vmatprep.subr.bf16.mxu0 %v3660_v4 }
 0x25c   :  { %2187 = vmatpush1.bf16.msra.mxu0 %v3658_v5 }
 0x25d   :  { %2188 = vmatprep.subr.bf16.mxu0 %v3663_v6 }
 0x260   :  { %2189 = vmatpush1.bf16.msra.mxu0 %v3661_v9 }
 0x261   :  { %2190 = vmatprep.subr.bf16.mxu0 %v3666_v10  ;;  %v3702_v10 = vld [vmem:[#allocation13] sm:$0xff]  }
 0x264   :  { %2191 = vmatpush1.bf16.msra.mxu0 %v3664_v12 }
 0x265   :  { %2192 = vmatprep.subr.bf16.mxu0 %v3669_v13  ;;  %v3703_v13 = vld [vmem:[#allocation13 + $0x8] sm:$0xff]  }
 0x268   :  { %2193 = vmatpush1.bf16.msra.mxu0 %v3667_v14  ;;  %v3704_v14 = vld [vmem:[#allocation13 + $0x10] sm:$0xff]  }
 0x26b   :  { %2195 = vmatmul.mubr.bf16.vlgmr.msra.gmra.mrb[4].mxu0 %v4131_v42  ;;  %v3693_v42 = vld [vmem:[#allocation10 + $0x38] sm:$0xff]  }
 0x33e   :  { %v2196_v24 = vpop.f32.mrb[4].mxu0 }
 0x33f   :  { %v3228_v25 = vadd.f32 %v2196_v24, %v1792_v22  ;;  %v2198_v26 = vpop.f32.mrb[5].mxu0 }
 0x340   :  { %v3229_v27 = vadd.f32 %v2198_v26, %v1796_v23  ;;  %v2200_v28 = vpop.f32.mrb[6].mxu0 }
 0x341   :  { %v3230_v29 = vadd.f32 %v2200_v28, %v1792_v22  ;;  %v2202_v30 = vpop.f32.mrb[7].mxu0  ;;  %v2205_v32 = vmax.f32 %v3228_v25, 0.0 }
 0x342   :  { %v3231_v31 = vadd.f32 %v2202_v30, %v1796_v23  ;;  %v2206_v34 = vmax.f32 %v3229_v27, 0.0 }
 0x343   :  { %v2207_v33 = vmax.f32 %v3230_v29, 0.0 }
 0x344   :  { %v2208_v35 = vmax.f32 %v3231_v31, 0.0 }
 0x345   :  { %v2209_v36 = vpack.c.bf16 %v2207_v33, %v2205_v32 }
 0x346   :  { %v2210_v37 = vpack.c.bf16 %v2208_v35, %v2206_v34 }
 0x348   :  { %2378 = vmatprep.mubr.bf16.mxu1 %v2210_v37 }
 0x349   :  { %2379 = vmatmul.mubr.bf16.vlgmr.msra.gmra.mrb[4].mxu1 %v2209_v36 }
 0x34a   :  { %3161 = vmatpush3.bf16.msra.mxu1 %v3686_v38  ;;  %3176 = vmatprep.mubr.msk.bf16.mxu1 %vm3937_vm1, %v3936_v20 }
 0x34b   :  { %3162 = vmatprep.subr.bf16.mxu1 %v3936_v20 }
 0x34e   :  { %3163 = vmatpush3.bf16.msra.mxu1 %v3687_v7 }
 0x34f   :  { %3164 = vmatprep.subr.bf16.mxu1 %v3936_v20 }
 0x352   :  { %3165 = vmatpush3.bf16.msra.mxu1 %v3688_v8 }
 0x353   :  { %3166 = vmatprep.subr.bf16.mxu1 %v3936_v20 }
 0x356   :  { %3167 = vmatpush3.bf16.msra.mxu1 %v3689_v11 }
 0x357   :  { %3168 = vmatprep.subr.bf16.mxu1 %v3936_v20 }
 0x35a   :  { %3169 = vmatpush3.bf16.msra.mxu1 %v3690_v39 }
 0x35b   :  { %3170 = vmatprep.subr.bf16.mxu1 %v3936_v20 }
 0x35e   :  { %3171 = vmatpush3.bf16.msra.mxu1 %v3691_v40 }
 0x35f   :  { %3172 = vmatprep.subr.bf16.mxu1 %v3936_v20 }
 0x362   :  { %3173 = vmatpush3.bf16.msra.mxu1 %v3692_v41 }
 0x363   :  { %3174 = vmatprep.subr.bf16.mxu1 %v3936_v20 }
 0x366   :  { %3175 = vmatpush3.bf16.msra.mxu1 %v3693_v42 }
 0x367   :  { %3180 = vmatprep.subr.bf16.mxu1 %v3936_v20 }
 0x41c   :  { %v3127_v43 = vpop.f32.mrb[4].mxu1 }
 0x41d   :  { %v3128_v45 = vpop.f32.mrb[5].mxu1 }
 0x41e   :  { %v3129_v46 = vadd.f32 %v3128_v45, %v3127_v43  ;;  %v3130_v47 = vpop.f32.mrb[6].mxu1 }
 0x41f   :  { %v3131_v48 = vpop.f32.mrb[7].mxu1 }
 0x420   :  { %v2381_v49 = vadd.f32 %v3129_v46, %v3049_v44  ;;  %v3132_v50 = vadd.f32 %v3131_v48, %v3130_v47 }
 0x422   :  { %v2384_v51 = vadd.f32 %v3132_v50, %v3049_v44  ;;  %v2387_v52 = vmax.f32 %v2381_v49, 0.0 }
 0x424   :  { %v2388_v53 = vmax.f32 %v2384_v51, 0.0 }
 0x426   :  { %v2389_v55 = vpack.c.bf16 %v2388_v53, %v2387_v52 }
 0x428   :  { %3177 = vmatmul.mubr.bf16.vlgmr.msra.gmra.mrb[8].mxu1 %v2389_v55 }
 0x429   :  { %3181 = vmatpush3.bf16.msra.mxu1 %v3694_v54  ;;  %3196 = vmatprep.mubr.msk.bf16.mxu1 %vm3937_vm1, %v3936_v20 }
 0x42a   :  { %3182 = vmatprep.subr.bf16.mxu1 %v3936_v20 }
 0x42d   :  { %3183 = vmatpush3.bf16.msra.mxu1 %v3695_v56 }
 0x42e   :  { %3184 = vmatprep.subr.bf16.mxu1 %v3936_v20 }
 0x431   :  { %3185 = vmatpush3.bf16.msra.mxu1 %v3696_v57 }
 0x432   :  { %3186 = vmatprep.subr.bf16.mxu1 %v3936_v20 }
 0x435   :  { %3187 = vmatpush3.bf16.msra.mxu1 %v3697_v58 }
 0x436   :  { %3188 = vmatprep.subr.bf16.mxu1 %v3936_v20 }
 0x439   :  { %3189 = vmatpush3.bf16.msra.mxu1 %v3698_v59 }
 0x43a   :  { %3190 = vmatprep.subr.bf16.mxu1 %v3936_v20 }
 0x43d   :  { %3191 = vmatpush3.bf16.msra.mxu1 %v3699_v60 }
 0x43e   :  { %3192 = vmatprep.subr.bf16.mxu1 %v3936_v20 }
 0x441   :  { %3193 = vmatpush3.bf16.msra.mxu1 %v3700_v61 }
 0x442   :  { %3194 = vmatprep.subr.bf16.mxu1 %v3936_v20 }
 0x445   :  { %3195 = vmatpush3.bf16.msra.mxu1 %v3701_v62 }
 0x446   :  { %3200 = vmatprep.subr.bf16.mxu1 %v3936_v20 }
 0x4fb   :  { %v2495_v0 = vpop.f32.mrb[8].mxu1 }
 0x4fc   :  { %v2496_v1 = vadd.f32 %v3066_v63, %v2495_v0  ;;  %v3178_v2 = vpop.f32.mrb[9].mxu1 }
 0x4fd   :  { %v2498_v3 = vpop.f32.mrb[10].mxu1 }
 0x4fe   :  { %v2499_v4 = vadd.f32 %v3066_v63, %v2498_v3  ;;  %v3179_v5 = vpop.f32.mrb[11].mxu1  ;;  %v2502_v6 = vmax.f32 %v2496_v1, 0.0 }
 0x500   :  { %v2503_v9 = vmax.f32 %v2499_v4, 0.0 }
 0x502   :  { %v2504_v12 = vpack.c.bf16 %v2503_v9, %v2502_v6 }
 0x504   :  { %3197 = vmatmul.mubr.bf16.vlgmr.msra.gmra.mrb[12].mxu1 %v2504_v12 }
 0x505   :  { %3201 = vmatpush3.bf16.msra.mxu1 %v3702_v10  ;;  %3216 = vmatprep.mubr.msk.bf16.mxu1 %vm3937_vm1, %v3936_v20 }
 0x506   :  { %3202 = vmatprep.subr.bf16.mxu1 %v3936_v20 }
 0x509   :  { %3203 = vmatpush3.bf16.msra.mxu1 %v3703_v13 }
 0x50a   :  { %3204 = vmatprep.subr.bf16.mxu1 %v3936_v20 }
 0x50d   :  { %3205 = vmatpush3.bf16.msra.mxu1 %v3704_v14 }
 0x50e   :  { %3206 = vmatprep.subr.bf16.mxu1 %v3936_v20 }
 0x511   :  { %3207 = vmatpush3.bf16.msra.mxu1 %v3705_v15 }
 0x512   :  { %3208 = vmatprep.subr.bf16.mxu1 %v3936_v20 }
 0x515   :  { %3209 = vmatpush3.bf16.msra.mxu1 %v3706_v16 }
 0x516   :  { %3210 = vmatprep.subr.bf16.mxu1 %v3936_v20 }
 0x519   :  { %3211 = vmatpush3.bf16.msra.mxu1 %v3707_v17 }
 0x51a   :  { %3212 = vmatprep.subr.bf16.mxu1 %v3936_v20 }
 0x51d   :  { %3213 = vmatpush3.bf16.msra.mxu1 %v3708_v18 }
 0x51e   :  { %3214 = vmatprep.subr.bf16.mxu1 %v3936_v20 }
 0x521   :  { %3215 = vmatpush3.bf16.msra.mxu1 %v3709_v19 }
 0x5d7   :  { %v2610_v22 = vpop.f32.mrb[12].mxu1 }
 0x5d8   :  { %v2611_v23 = vadd.f32 %v3075_v21, %v2610_v22  ;;  %v3198_v24 = vpop.f32.mrb[13].mxu1 }
 0x5d9   :  { %v2613_v25 = vpop.f32.mrb[14].mxu1 }
 0x5da   :  { %v2614_v26 = vadd.f32 %v3075_v21, %v2613_v25  ;;  %v3199_v27 = vpop.f32.mrb[15].mxu1  ;;  %v2617_v28 = vmax.f32 %v2611_v23, 0.0 }
 0x5dc   :  { %v2618_v29 = vmax.f32 %v2614_v26, 0.0 }
 0x5de   :  { %v2619_v30 = vpack.c.bf16 %v2618_v29, %v2617_v28 }
 0x5e0   :  { %3105 = vst [vmem:[#allocation15] sm:$0xff] %v2619_v30   ;;  %3217 = vmatmul.mubr.bf16.vlgmr.msra.gmra.mrb[16].mxu1 %v2619_v30 }
 0x5e1   :  { %3875 = shalt.err (!%p3872_p4)
}
 0x5e2   :  { %s3876_s29 = scalar_lea.hbm %s4227_s14, 128 }
 0x5e3   :  { %p3877_p5 = scmp.ne.s32.totalorder %s4227_s14, %s3876_s29  ;;  %p3880_p6 = scmp.lt.u32.totalorder %s3876_s29, %s4227_s14 }
 0x5e5   :  { %p3882_p7 = pnand %p3880_p6, %p3877_p5 }
 0x5e7   :  { %3885 = shalt.err (!%p3882_p7)
}
 0x5e8   :  { %2774 = dma.vmem_to_hbm [thread:$0]  %s2769_s26, 128, %s4227_s14, [#allocation16], %s3924_s1, %s3924_s1, %s3925_s30  }
 0x5e9   :  { %v3086_v20 = vld [vmem:[%s4225_s12] ss:$0 sm:$0xff]  ;;  %s3939_s7 = smov [#allocation14]  }
 0x5ea   :  { %s2756_s25 = sshll.u32 %s3939_s7, 4  ;;  %s2757_s25 = int_to_ptr.vmem [resolvable:$true] %s2756_s25 }
 0x5eb   :  { %s3886_s11 = scalar_lea.vmem %s2757_s25, 128  ;;  %p3891_p9 = scmp.lt.s32.totalorder %s2757_s25, %s2757_s25 }
 0x5ec   :  { %p3887_p8 = scmp.ne.s32.totalorder %s2757_s25, %s3886_s11  ;;  %p3892_p10 = scmp.lt.s32.totalorder %s3886_s11, %s3886_s11 }
 0x5ee   :  { %p3893_p11 = por %p3892_p10, %p3891_p9 }
 0x5f0   :  { %p3894_p12 = pnand %p3893_p11, %p3887_p8 }
 0x6b3   :  { %v2734_v31 = vpop.f32.mrb[16].mxu1 }
 0x6b4   :  { %v3218_v32 = vpop.f32.mrb[17].mxu1  ;;  %v2735_v34 = vadd.f32 %v3086_v20, %v2734_v31 }
 0x6b5   :  { %v2737_v33 = vpop.f32.mrb[18].mxu1 }
 0x6b6   :  { %v2738_v35 = vadd.f32 %v3086_v20, %v2737_v33  ;;  %v3219_v36 = vpop.f32.mrb[19].mxu1 }
 0x6b8   :  { %v3109_v37 = vpack.c.bf16 %v2738_v35, %v2735_v34 }
 0x6ba   :  { %3110 = vst [vmem:[#allocation14] sm:$0xff] %v3109_v37  }
 0x6bb   :  { %3897 = shalt.err (!%p3894_p12)
}
 0x6bc   :  { %s3898_s19 = scalar_lea.hbm %s4226_s13, 128 }
 0x6bd   :  { %p3899_p13 = scmp.ne.s32.totalorder %s4226_s13, %s3898_s19  ;;  %p3902_p0 = scmp.lt.u32.totalorder %s3898_s19, %s4226_s13 }
 0x6bf   :  { %p3904_p1 = pnand %p3902_p0, %p3899_p13 }
 0x6c1   :  { %3907 = shalt.err (!%p3904_p1)
}
 0x6c2   :  { %2762 = dma.vmem_to_hbm [thread:$0]  %s2757_s25, 128, %s4226_s13, [#allocation4], %s3924_s1, %s3924_s1, %s3925_s30  }
 0x6c3   :  { %3916 = dma.done.wait [#allocation4], 128  }
 0x6c4   :  { %3917 = vsyncadd [#allocation4], 4294967168 }
 0x6c5   :  { %3918 = dma.done.wait [#allocation16], 128  }
 0x6c6   :  { %3919 = vsyncadd [#allocation16], 4294967168 }
 0x6c7   :  { %2781 = vsyncpa [#allocation3], 1 }
 0x6c8   :  { %2782 = vsyncpa [#allocation6], 1 }
 0x6c9   :  { %2783 = vsyncpa [#allocation9], 1 }
 0x6ca   :  { %2784 = vsyncpa [#allocation12], 1 }
 0x6cb   :  { %2785 = vsyncpa [#allocation4], 1 }
 0x6cc   :  { %2786 = vsyncpa [#allocation16], 1 }

</bundles_post_ra>
